<compile_context>
chip_gen: v7x
topology: tpu7x:2x2x1
jax: 0.10.0
libtpu: 0.0.40
codegen_flags: <defaults>
</compile_context>

<pallas_src>
import functools

import jax
import jax.numpy as jnp
from jax import lax
from jax.experimental import pallas as pl
from jax.experimental.pallas import tpu as pltpu

EPS = 1e-5                      # torch.nn.BatchNorm2d default
MXU_DTYPE = jnp.bfloat16        # MXU-native operand dtype (f32 accumulation)

_VMEM_LIMIT_CACHE = []


def _vmem_limit_bytes():
    if _VMEM_LIMIT_CACHE:
        return _VMEM_LIMIT_CACHE[0]
    limit = 56 * 1024 * 1024            # safe everywhere (v7x has 64 MiB physical)
    try:
        cap = int(pltpu.get_tpu_info().vmem_capacity_bytes)
        limit = min(cap * 7 // 8, 112 * 1024 * 1024)
    except Exception:
        pass
    _VMEM_LIMIT_CACHE.append(limit)
    return limit


def _compiler_params():
    return pltpu.CompilerParams(dimension_semantics=("parallel",),
                                vmem_limit_bytes=_vmem_limit_bytes())


def _round_up(v, m):
    return -(-v // m) * m


# --------------------------------------------------------------- Pallas kernels

def _conv1_kernel(*args, taps, cin, stride, wp1, wo, ho, lw1, head2, wp2, has_ds):
    """conv1 (3x3, stride s) + optional fused 1x1 downsample, one image per step.

    Input is the zero-padded, row-flattened image in channels-first layout
    (Cin sublanes x R lanes).  The 9 shifted tap slices are stacked into a
    (9*Cin, lw1) operand and contracted in a single MXU matmul; the lane-dense
    (Cout, lw1) f32 accumulator stays in vregs.  Per-image BN batch statistics
    are emitted from the f32 accumulator, and the output is written (bf16)
    directly into conv2's zero-padded flat input layout.
    """
    it = iter(args)
    x_ref = next(it)
    w_ref = next(it)
    wd_ref = next(it) if has_ds else None
    y_ref = next(it)
    s_ref = next(it)
    q_ref = next(it)
    if has_ds:
        r_ref = next(it)
        sd_ref = next(it)
        qd_ref = next(it)
    st_ref = next(it)                              # (9*Cin, lw1) bf16 VMEM scratch

    # Stack the 9 shifted tap slices into one MXU operand.
    for t, (p, base) in enumerate(taps):
        if stride == 1:
            st_ref[t * cin:(t + 1) * cin, :] = x_ref[0, :, base:base + lw1]
        else:
            st_ref[t * cin:(t + 1) * cin, :] = x_ref[0, p, :, base:base + lw1]

    # Single MXU pass: (Cout, 9*Cin) @ (9*Cin, lw1) -> lane-dense (Cout, lw1) f32.
    acc = jnp.dot(w_ref[...], st_ref[...], preferred_element_type=jnp.float32)

    # In-kernel junk-column mask (wide rows are wp1 wide; cols >= wo are junk).
    col = lax.broadcasted_iota(jnp.int32, acc.shape, 1) % wp1
    accm = jnp.where(col < wo, acc, 0.0)

    # Per-image BN1 batch statistics from the f32 accumulator.
    s_ref[0] = jnp.sum(accm, axis=-1, keepdims=True)
    q_ref[0] = jnp.sum(accm * accm, axis=-1, keepdims=True)

    # Write conv1's output straight into conv2's zero-padded flat layout (bf16);
    # padding / junk positions of the buffer are well-defined zeros.
    y_ref[0] = jnp.zeros((y_ref.shape[1], y_ref.shape[2]), y_ref.dtype)
    if stride == 1:
        y_ref[0, :, head2:head2 + lw1] = accm.astype(y_ref.dtype)
    else:
        for oh in range(ho):
            y_ref[0, :, head2 + oh * wp2:head2 + oh * wp2 + wo] = (
                accm[:, oh * wp1:oh * wp1 + wo].astype(y_ref.dtype))

    if has_ds:
        # 1x1 downsample conv = centre tap with its own weights.
        ctr = st_ref[4 * cin:5 * cin, :]
        r = jnp.dot(wd_ref[...], ctr, preferred_element_type=jnp.float32)
        rm = jnp.where(col < wo, r, 0.0)
        sd_ref[0] = jnp.sum(rm, axis=-1, keepdims=True)
        qd_ref[0] = jnp.sum(rm * rm, axis=-1, keepdims=True)
        if stride == 1:
            r_ref[0] = rm
        else:
            r_ref[0] = jnp.zeros((r_ref.shape[1], r_ref.shape[2]), r_ref.dtype)
            for oh in range(ho):
                r_ref[0, :, oh * wp2:oh * wp2 + wo] = rm[:, oh * wp1:oh * wp1 + wo]


def _conv2_kernel(y1_ref, w_ref, sc_ref, sh_ref, y2_ref, s_ref, q_ref,
                  h_ref, st_ref, *, cout, wp2, wo, lw2, head2):
    """conv2 (3x3, stride 1) with bn1 + ReLU fused into its input path."""
    x = y1_ref[0].astype(jnp.float32)                       # (Cout, R2)
    # In-kernel position-validity mask (padding / junk columns -> exact 0 input).
    idx = lax.broadcasted_iota(jnp.int32, x.shape, 1)
    q = idx - head2
    qc = jnp.clip(q, 0, lw2 - 1)
    valid = (q >= 0) & (q < lw2) & (qc % wp2 < wo)
    h = jnp.where(valid, jnp.maximum(x * sc_ref[...] + sh_ref[...], 0.0), 0.0)
    h_ref[...] = h.astype(h_ref.dtype)

    for kh in range(3):
        for kw in range(3):
            t = kh * 3 + kw
            base = head2 + (kh - 1) * wp2 + (kw - 1)
            st_ref[t * cout:(t + 1) * cout, :] = h_ref[:, base:base + lw2]

    acc = jnp.dot(w_ref[...], st_ref[...], preferred_element_type=jnp.float32)
    y2_ref[0] = acc

    col = lax.broadcasted_iota(jnp.int32, acc.shape, 1) % wp2
    accm = jnp.where(col < wo, acc, 0.0)
    s_ref[0] = jnp.sum(accm, axis=-1, keepdims=True)
    q_ref[0] = jnp.sum(accm * accm, axis=-1, keepdims=True)


def _bn_add_relu_ds_kernel(y2_ref, sc_ref, sh_ref, r_ref, scd_ref, shd_ref, o_ref):
    """relu(bn2(conv2) + bn_d(1x1 downsample))."""
    a = y2_ref[0] * sc_ref[...] + sh_ref[...]
    b = r_ref[0] * scd_ref[...] + shd_ref[...]
    o_ref[0] = jnp.maximum(a + b, 0.0)


def _bn_add_relu_id_kernel(y2_ref, sc_ref, sh_ref, x_ref, o_ref, *, head1, lw2):
    """relu(bn2(conv2) + identity); identity read from the padded conv1 input."""
    a = y2_ref[0] * sc_ref[...] + sh_ref[...]
    r = x_ref[0, :, head1:head1 + lw2].astype(jnp.float32)
    o_ref[0] = jnp.maximum(a + r, 0.0)


# ------------------------------------------------------------ pallas_call glue

def _conv1_call(xb, w1m, wdm, *, stride, taps, wp1, wo, ho, lw1, head2, wp2,
                lw2, r2):
    n = xb.shape[0]
    cin = w1m.shape[1] // 9
    cout = w1m.shape[0]
    has_ds = wdm is not None

    if stride == 1:
        x_spec = pl.BlockSpec((1,) + xb.shape[1:], lambda i: (i, 0, 0))
    else:
        x_spec = pl.BlockSpec((1,) + xb.shape[1:], lambda i: (i, 0, 0, 0))

    inputs = [xb, w1m]
    in_specs = [x_spec, pl.BlockSpec(w1m.shape, lambda i: (0, 0))]
    if has_ds:
        inputs.append(wdm)
        in_specs.append(pl.BlockSpec(wdm.shape, lambda i: (0, 0)))

    img = pl.BlockSpec((1, cout, r2), lambda i: (i, 0, 0))
    vec = pl.BlockSpec((1, cout, 1), lambda i: (i, 0, 0))
    out_shape = [jax.ShapeDtypeStruct((n, cout, r2), MXU_DTYPE),
                 jax.ShapeDtypeStruct((n, cout, 1), jnp.float32),
                 jax.ShapeDtypeStruct((n, cout, 1), jnp.float32)]
    out_specs = [img, vec, vec]
    if has_ds:
        out_shape += [jax.ShapeDtypeStruct((n, cout, lw2), jnp.float32),
                      jax.ShapeDtypeStruct((n, cout, 1), jnp.float32),
                      jax.ShapeDtypeStruct((n, cout, 1), jnp.float32)]
        out_specs += [pl.BlockSpec((1, cout, lw2), lambda i: (i, 0, 0)), vec, vec]

    kernel = functools.partial(
        _conv1_kernel, taps=tuple(taps), cin=cin, stride=stride, wp1=wp1, wo=wo,
        ho=ho, lw1=lw1, head2=head2, wp2=wp2, has_ds=has_ds)

    return pl.pallas_call(
        kernel,
        out_shape=tuple(out_shape),
        grid=(n,),
        in_specs=in_specs,
        out_specs=tuple(out_specs),
        scratch_shapes=[pltpu.VMEM((9 * cin, lw1), MXU_DTYPE)],
        compiler_params=_compiler_params(),
    )(*inputs)


def _conv2_call(y1buf, w2m, sc1, sh1, *, wp2, wo, lw2, head2):
    n, cout, r2 = y1buf.shape
    kernel = functools.partial(_conv2_kernel, cout=cout, wp2=wp2, wo=wo,
                               lw2=lw2, head2=head2)
    img = pl.BlockSpec((1, cout, lw2), lambda i: (i, 0, 0))
    vec = pl.BlockSpec((1, cout, 1), lambda i: (i, 0, 0))
    cvec = pl.BlockSpec((cout, 1), lambda i: (0, 0))
    return pl.pallas_call(
        kernel,
        out_shape=(jax.ShapeDtypeStruct((n, cout, lw2), jnp.float32),
                   jax.ShapeDtypeStruct((n, cout, 1), jnp.float32),
                   jax.ShapeDtypeStruct((n, cout, 1), jnp.float32)),
        grid=(n,),
        in_specs=[pl.BlockSpec((1, cout, r2), lambda i: (i, 0, 0)),
                  pl.BlockSpec(w2m.shape, lambda i: (0, 0)),
                  cvec, cvec],
        out_specs=(img, vec, vec),
        scratch_shapes=[pltpu.VMEM((cout, r2), MXU_DTYPE),
                        pltpu.VMEM((9 * cout, lw2), MXU_DTYPE)],
        compiler_params=_compiler_params(),
    )(y1buf, w2m, sc1, sh1)


def _bn_add_relu_call(y2, sc2, sh2, *, residual=None, scd=None, shd=None,
                      xbuf=None, head1=None):
    n, cout, lw2 = y2.shape
    tile = pl.BlockSpec((1, cout, lw2), lambda i: (i, 0, 0))
    cvec = pl.BlockSpec((cout, 1), lambda i: (0, 0))
    if residual is not None:                       # downsample branch
        return pl.pallas_call(
            _bn_add_relu_ds_kernel,
            out_shape=jax.ShapeDtypeStruct((n, cout, lw2), jnp.float32),
            grid=(n,),
            in_specs=[tile, cvec, cvec, tile, cvec, cvec],
            out_specs=tile,
            compiler_params=_compiler_params(),
        )(y2, sc2, sh2, residual, scd, shd)
    kernel = functools.partial(_bn_add_relu_id_kernel, head1=head1, lw2=lw2)
    return pl.pallas_call(                         # identity branch
        kernel,
        out_shape=jax.ShapeDtypeStruct((n, cout, lw2), jnp.float32),
        grid=(n,),
        in_specs=[tile, cvec, cvec,
                  pl.BlockSpec((1,) + xbuf.shape[1:], lambda i: (i, 0, 0))],
        out_specs=tile,
        compiler_params=_compiler_params(),
    )(y2, sc2, sh2, xbuf)


# ------------------------------------------------------------- BN (XLA, tiny)

def _bn_scale_shift(psum, pssq, m, gamma, beta):
    s = jnp.sum(psum, axis=0)                      # (C, 1) from per-image partials
    q = jnp.sum(pssq, axis=0)
    mean = s / m
    var = jnp.maximum(q / m - mean * mean, 0.0)    # biased var (torch training BN)
    scale = gamma.reshape(-1, 1) * lax.rsqrt(var + EPS)
    shift = beta.reshape(-1, 1) - mean * scale
    return scale, shift


# --------------------------------------------------------------- block forward

def res_block_forward(x_nchw, params, stride):
    x = x_nchw.astype(jnp.float32)
    n, cin, h, w = x.shape
    cout = params["w1"].shape[0]
    has_ds = cout != cin
    if not has_ds and stride != 1:
        raise ValueError("identity shortcut requires stride == 1 (as in the torch module)")

    ho = (h - 1) // stride + 1
    wo = (w - 1) // stride + 1
    wp1 = w + 2                                    # conv1 flat row width
    wp2 = wo + 2                                   # conv2 flat row width / wide-out width
    lw1 = ho * wp1                                 # conv1 wide-output length
    lw2 = ho * wp2                                 # conv2 wide-output length
    head1 = _round_up(wp1 + 1, 128)                # 128-aligned zero head before the data slab
    head2 = _round_up(wp2 + 1, 128)
    r1 = _round_up(head1 + stride * lw1 + wp1 + 2, 128 * stride)
    r2 = _round_up(head2 + lw2 + wp2 + 1, 128)

    # ---- input: NCHW already has channels-on-sublanes / spatial-on-lanes.
    #      Right-pad rows to wp1, flatten, add zero head/tail, cast to bf16 once.
    xb = x.astype(MXU_DTYPE)
    xb = jnp.pad(xb, ((0, 0), (0, 0), (0, 0), (0, wp1 - w)))
    xb = xb.reshape(n, cin, h * wp1)
    xb = jnp.pad(xb, ((0, 0), (0, 0), (head1, r1 - head1 - h * wp1)))
    if stride != 1:                                # even/odd row-phase split
        xb = jnp.transpose(xb.reshape(n, cin, r1 // stride, stride), (0, 3, 1, 2))

    # Tap (kh, kw) of conv1 reads flat index head1 + stride*q + off.
    taps = []
    for kh in range(3):
        for kw in range(3):
            off = (kh - 1) * wp1 + (kw - 1)
            p = (head1 + off) % stride
            taps.append((p, (head1 + off - p) // stride))

    w1m = params["w1"].transpose(0, 2, 3, 1).reshape(cout, 9 * cin).astype(MXU_DTYPE)
    wdm = params["wd"].reshape(cout, cin).astype(MXU_DTYPE) if has_ds else None

    # ---- conv1 (+ fused 1x1 downsample); emits BN batch statistics ----
    res = _conv1_call(xb, w1m, wdm, stride=stride, taps=taps, wp1=wp1, wo=wo,
                      ho=ho, lw1=lw1, head2=head2, wp2=wp2, lw2=lw2, r2=r2)
    if has_ds:
        y1, s1, q1, rds, sd, qd = res
    else:
        y1, s1, q1 = res

    m = float(n * ho * wo)
    sc1, sh1 = _bn_scale_shift(s1, q1, m, params["g1"], params["b1"])

    # ---- conv2 with bn1 + ReLU fused into its input path ----
    w2m = params["w2"].transpose(0, 2, 3, 1).reshape(cout, 9 * cout).astype(MXU_DTYPE)
    y2, s2, q2 = _conv2_call(y1, w2m, sc1, sh1, wp2=wp2, wo=wo, lw2=lw2, head2=head2)
    sc2, sh2 = _bn_scale_shift(s2, q2, m, params["g2"], params["b2"])

    # ---- bn2 + residual + ReLU ----
    if has_ds:
        scd, shd = _bn_scale_shift(sd, qd, m, params["gd"], params["bd"])
        out = _bn_add_relu_call(y2, sc2, sh2, residual=rds, scd=scd, shd=shd)
    else:
        out = _bn_add_relu_call(y2, sc2, sh2, xbuf=xb, head1=head1)

    # wide layout -> NCHW (drop the 2 junk columns per row)
    out = out.reshape(n, cout, ho, wp2)[:, :, :, :wo]
    return out


# ------------------------------------------ pure-JAX reference (for validation)

def _conv_ref(x, w, stride, pad):
    return lax.conv_general_dilated(
        x, w, (stride, stride), ((pad, pad), (pad, pad)),
        dimension_numbers=("NCHW", "OIHW", "NCHW"))


def _bn_train_ref(x, gamma, beta):
    mean = x.mean(axis=(0, 2, 3), keepdims=True)
    var = x.var(axis=(0, 2, 3), keepdims=True)
    return (x - mean) * lax.rsqrt(var + EPS) * gamma.reshape(1, -1, 1, 1) \
        + beta.reshape(1, -1, 1, 1)


def res_block_ref(x, params, stride):
    cin, cout = x.shape[1], params["w1"].shape[0]
    h = jax.nn.relu(_bn_train_ref(_conv_ref(x, params["w1"], stride, 1),
                                  params["g1"], params["b1"]))
    h = _bn_train_ref(_conv_ref(h, params["w2"], 1, 1), params["g2"], params["b2"])
    if cout == cin:
        res = x
    else:
        res = _bn_train_ref(_conv_ref(x, params["wd"], stride, 0),
                            params["gd"], params["bd"])
    return jax.nn.relu(h + res)


def init_params(key, cin, cout):
    k = jax.random.split(key, 9)
    return {
        "w1": 0.1 * jax.random.normal(k[0], (cout, cin, 3, 3), jnp.float32),
        "g1": 1.0 + 0.1 * jax.random.normal(k[1], (cout,), jnp.float32),
        "b1": 0.1 * jax.random.normal(k[2], (cout,), jnp.float32),
        "w2": 0.1 * jax.random.normal(k[3], (cout, cout, 3, 3), jnp.float32),
        "g2": 1.0 + 0.1 * jax.random.normal(k[4], (cout,), jnp.float32),
        "b2": 0.1 * jax.random.normal(k[5], (cout,), jnp.float32),
        "wd": 0.1 * jax.random.normal(k[6], (cout, cin, 1, 1), jnp.float32),
        "gd": 1.0 + 0.1 * jax.random.normal(k[7], (cout,), jnp.float32),
        "bd": 0.1 * jax.random.normal(k[8], (cout,), jnp.float32),
    }


if __name__ == "__main__":
    key = jax.random.PRNGKey(0)
    kx, kp1, kp2 = jax.random.split(key, 3)

    x = jax.random.normal(kx, (2, 4, 16, 16), jnp.float32)
    fwd = jax.jit(res_block_forward, static_argnames=("stride",))

    # bf16 MXU operands + bf16 intermediate y1 -> compare against the f32
    # reference at ~2-3% tolerance.
    tol = dict(atol=3e-2, rtol=3e-2)

    # case 1: channel-expanding block (fused 1x1 downsample branch), stride 1
    params = init_params(kp1, 4, 8)
    out = jax.block_until_ready(fwd(x, params, stride=1))
    ref = res_block_ref(x, params, 1)
    assert out.shape == (2, 8, 16, 16)
    assert jnp.allclose(out, ref, **tol), float(jnp.abs(out - ref).max())

    # case 2: identity-shortcut block (input_layer == output_layer), stride 1
    params2 = init_params(kp2, 4, 4)
    out2 = jax.block_until_ready(fwd(x, params2, stride=1))
    ref2 = res_block_ref(x, params2, 1)
    assert out2.shape == (2, 4, 16, 16)
    assert jnp.allclose(out2, ref2, **tol), float(jnp.abs(out2 - ref2).max())

    # case 3: strided channel-expanding block (stride 2, downsample branch)
    out3 = jax.block_until_ready(fwd(x, params, stride=2))
    ref3 = res_block_ref(x, params, 2)
    assert out3.shape == (2, 8, 8, 8)
    assert jnp.allclose(out3, ref3, **tol), float(jnp.abs(out3 - ref3).max())

    print("KERNEL_OK")
</pallas_src>

<mosaic_0001>
module attributes {stable_mosaic.version = 11 : i64} {
  func.func @_conv1_kernel(%arg0: i32, %arg1: memref<1x4x512xbf16, #tpu.memory_space<vmem>>, %arg2: memref<8x36xbf16, #tpu.memory_space<vmem>>, %arg3: memref<8x4xbf16, #tpu.memory_space<vmem>>, %arg4: memref<1x8x512xbf16, #tpu.memory_space<vmem>>, %arg5: memref<1x8x1xf32, #tpu.memory_space<vmem>>, %arg6: memref<1x8x1xf32, #tpu.memory_space<vmem>>, %arg7: memref<1x8x288xf32, #tpu.memory_space<vmem>>, %arg8: memref<1x8x1xf32, #tpu.memory_space<vmem>>, %arg9: memref<1x8x1xf32, #tpu.memory_space<vmem>>, %arg10: memref<36x288xbf16, #tpu.memory_space<vmem>>) attributes {dimension_semantics = [#tpu.dimension_semantics<parallel>], iteration_bounds = array<i64: 2>, scalar_prefetch = 0 : i64, scratch_operands = 1 : i64, tpu.core_type = #tpu.core_type<tc>, window_params = [{transform_indices = @transform_0, window_bounds = array<i64: 1, 4, 512>}, {pipeline_mode = #tpu.pipeline_mode<synchronous>, transform_indices = @transform_1, window_bounds = array<i64: 8, 36>}, {pipeline_mode = #tpu.pipeline_mode<synchronous>, transform_indices = @transform_2, window_bounds = array<i64: 8, 4>}, {transform_indices = @transform_3, window_bounds = array<i64: 1, 8, 512>}, {transform_indices = @transform_4, window_bounds = array<i64: 1, 8, 1>}, {transform_indices = @transform_5, window_bounds = array<i64: 1, 8, 1>}, {transform_indices = @transform_6, window_bounds = array<i64: 1, 8, 288>}, {transform_indices = @transform_7, window_bounds = array<i64: 1, 8, 1>}, {transform_indices = @transform_8, window_bounds = array<i64: 1, 8, 1>}]} {
    %c0 = arith.constant 0 : index
    %c0_0 = arith.constant 0 : index
    %c109 = arith.constant 109 : index
    %0 = vector.load %arg1[%c0, %c0_0, %c109] : memref<1x4x512xbf16, #tpu.memory_space<vmem>>, vector<1x4x288xbf16>
    %1 = vector.shape_cast %0 : vector<1x4x288xbf16> to vector<4x288xbf16>
    %c0_1 = arith.constant 0 : index
    %c0_2 = arith.constant 0 : index
    %2 = vector.load %arg10[%c0_1, %c0_2] : memref<36x288xbf16, #tpu.memory_space<vmem>>, vector<4x288xbf16>
    tpu.vector_store %arg10[%c0_1, %c0_2], %1 {strides = array<i32>} : memref<36x288xbf16, #tpu.memory_space<vmem>>, vector<4x288xbf16>,
    %c0_3 = arith.constant 0 : index
    %c0_4 = arith.constant 0 : index
    %c110 = arith.constant 110 : index
    %3 = vector.load %arg1[%c0_3, %c0_4, %c110] : memref<1x4x512xbf16, #tpu.memory_space<vmem>>, vector<1x4x288xbf16>
    %4 = vector.shape_cast %3 : vector<1x4x288xbf16> to vector<4x288xbf16>
    %c4 = arith.constant 4 : index
    %c0_5 = arith.constant 0 : index
    %5 = vector.load %arg10[%c4, %c0_5] : memref<36x288xbf16, #tpu.memory_space<vmem>>, vector<4x288xbf16>
    tpu.vector_store %arg10[%c4, %c0_5], %4 {strides = array<i32>} : memref<36x288xbf16, #tpu.memory_space<vmem>>, vector<4x288xbf16>,
    %c0_6 = arith.constant 0 : index
    %c0_7 = arith.constant 0 : index
    %c111 = arith.constant 111 : index
    %6 = vector.load %arg1[%c0_6, %c0_7, %c111] : memref<1x4x512xbf16, #tpu.memory_space<vmem>>, vector<1x4x288xbf16>
    %7 = vector.shape_cast %6 : vector<1x4x288xbf16> to vector<4x288xbf16>
    %c8 = arith.constant 8 : index
    %c0_8 = arith.constant 0 : index
    %8 = vector.load %arg10[%c8, %c0_8] : memref<36x288xbf16, #tpu.memory_space<vmem>>, vector<4x288xbf16>
    tpu.vector_store %arg10[%c8, %c0_8], %7 {strides = array<i32>} : memref<36x288xbf16, #tpu.memory_space<vmem>>, vector<4x288xbf16>,
    %c0_9 = arith.constant 0 : index
    %c0_10 = arith.constant 0 : index
    %c127 = arith.constant 127 : index
    %9 = vector.load %arg1[%c0_9, %c0_10, %c127] : memref<1x4x512xbf16, #tpu.memory_space<vmem>>, vector<1x4x288xbf16>
    %10 = vector.shape_cast %9 : vector<1x4x288xbf16> to vector<4x288xbf16>
    %c12 = arith.constant 12 : index
    %c0_11 = arith.constant 0 : index
    %11 = vector.load %arg10[%c12, %c0_11] : memref<36x288xbf16, #tpu.memory_space<vmem>>, vector<4x288xbf16>
    tpu.vector_store %arg10[%c12, %c0_11], %10 {strides = array<i32>} : memref<36x288xbf16, #tpu.memory_space<vmem>>, vector<4x288xbf16>,
    %c0_12 = arith.constant 0 : index
    %c0_13 = arith.constant 0 : index
    %c128 = arith.constant 128 : index
    %12 = vector.load %arg1[%c0_12, %c0_13, %c128] : memref<1x4x512xbf16, #tpu.memory_space<vmem>>, vector<1x4x288xbf16>
    %13 = vector.shape_cast %12 : vector<1x4x288xbf16> to vector<4x288xbf16>
    %c16 = arith.constant 16 : index
    %c0_14 = arith.constant 0 : index
    %14 = vector.load %arg10[%c16, %c0_14] : memref<36x288xbf16, #tpu.memory_space<vmem>>, vector<4x288xbf16>
    tpu.vector_store %arg10[%c16, %c0_14], %13 {strides = array<i32>} : memref<36x288xbf16, #tpu.memory_space<vmem>>, vector<4x288xbf16>,
    %c0_15 = arith.constant 0 : index
    %c0_16 = arith.constant 0 : index
    %c129 = arith.constant 129 : index
    %15 = vector.load %arg1[%c0_15, %c0_16, %c129] : memref<1x4x512xbf16, #tpu.memory_space<vmem>>, vector<1x4x288xbf16>
    %16 = vector.shape_cast %15 : vector<1x4x288xbf16> to vector<4x288xbf16>
    %c20 = arith.constant 20 : index
    %c0_17 = arith.constant 0 : index
    %17 = vector.load %arg10[%c20, %c0_17] : memref<36x288xbf16, #tpu.memory_space<vmem>>, vector<4x288xbf16>
    tpu.vector_store %arg10[%c20, %c0_17], %16 {strides = array<i32>} : memref<36x288xbf16, #tpu.memory_space<vmem>>, vector<4x288xbf16>,
    %c0_18 = arith.constant 0 : index
    %c0_19 = arith.constant 0 : index
    %c145 = arith.constant 145 : index
    %18 = vector.load %arg1[%c0_18, %c0_19, %c145] : memref<1x4x512xbf16, #tpu.memory_space<vmem>>, vector<1x4x288xbf16>
    %19 = vector.shape_cast %18 : vector<1x4x288xbf16> to vector<4x288xbf16>
    %c24 = arith.constant 24 : index
    %c0_20 = arith.constant 0 : index
    %20 = vector.load %arg10[%c24, %c0_20] : memref<36x288xbf16, #tpu.memory_space<vmem>>, vector<4x288xbf16>
    tpu.vector_store %arg10[%c24, %c0_20], %19 {strides = array<i32>} : memref<36x288xbf16, #tpu.memory_space<vmem>>, vector<4x288xbf16>,
    %c0_21 = arith.constant 0 : index
    %c0_22 = arith.constant 0 : index
    %c146 = arith.constant 146 : index
    %21 = vector.load %arg1[%c0_21, %c0_22, %c146] : memref<1x4x512xbf16, #tpu.memory_space<vmem>>, vector<1x4x288xbf16>
    %22 = vector.shape_cast %21 : vector<1x4x288xbf16> to vector<4x288xbf16>
    %c28 = arith.constant 28 : index
    %c0_23 = arith.constant 0 : index
    %23 = vector.load %arg10[%c28, %c0_23] : memref<36x288xbf16, #tpu.memory_space<vmem>>, vector<4x288xbf16>
    tpu.vector_store %arg10[%c28, %c0_23], %22 {strides = array<i32>} : memref<36x288xbf16, #tpu.memory_space<vmem>>, vector<4x288xbf16>,
    %c0_24 = arith.constant 0 : index
    %c0_25 = arith.constant 0 : index
    %c147 = arith.constant 147 : index
    %24 = vector.load %arg1[%c0_24, %c0_25, %c147] : memref<1x4x512xbf16, #tpu.memory_space<vmem>>, vector<1x4x288xbf16>
    %25 = vector.shape_cast %24 : vector<1x4x288xbf16> to vector<4x288xbf16>
    %c32 = arith.constant 32 : index
    %c0_26 = arith.constant 0 : index
    %26 = vector.load %arg10[%c32, %c0_26] : memref<36x288xbf16, #tpu.memory_space<vmem>>, vector<4x288xbf16>
    tpu.vector_store %arg10[%c32, %c0_26], %25 {strides = array<i32>} : memref<36x288xbf16, #tpu.memory_space<vmem>>, vector<4x288xbf16>,
    %c0_27 = arith.constant 0 : index
    %c0_28 = arith.constant 0 : index
    %27 = vector.load %arg2[%c0_27, %c0_28] : memref<8x36xbf16, #tpu.memory_space<vmem>>, vector<8x36xbf16>
    %c0_29 = arith.constant 0 : index
    %c0_30 = arith.constant 0 : index
    %28 = vector.load %arg10[%c0_29, %c0_30] : memref<36x288xbf16, #tpu.memory_space<vmem>>, vector<36x288xbf16>
    %cst = arith.constant dense<0.000000e+00> : vector<8x288xf32>
    %29 = tpu.matmul %27, %28, %cst {dimension_numbers = #tpu.dot_dimension_numbers<[1], [0], [0], [1], [0, 0, 1, 1], [], []>} : vector<8x36xbf16>, vector<36x288xbf16>, vector<8x288xf32> -> vector<8x288xf32>
    %30 = tpu.iota {dimensions = array<i32: 1>} : vector<8x288xi32>
    %c18_i32 = arith.constant 18 : i32
    %c0_i32 = arith.constant 0 : i32
    %31 = arith.cmpi eq, %c18_i32, %c0_i32 : i32
    %c1_i32 = arith.constant 1 : i32
    %32 = arith.select %31, %c1_i32, %c18_i32 : i32
    %33 = vector.broadcast %32 : i32 to vector<8x288xi32>
    %34 = arith.remsi %30, %33 : vector<8x288xi32>
    %c0_i32_31 = arith.constant 0 : i32
    %35 = vector.broadcast %c0_i32_31 : i32 to vector<8x288xi32>
    %36 = arith.cmpi ne, %34, %35 : vector<8x288xi32>
    %c0_i32_32 = arith.constant 0 : i32
    %37 = vector.broadcast %c0_i32_32 : i32 to vector<8x288xi32>
    %38 = arith.cmpi slt, %34, %37 : vector<8x288xi32>
    %c0_i32_33 = arith.constant 0 : i32
    %39 = arith.cmpi slt, %32, %c0_i32_33 : i32
    %40 = vector.broadcast %39 : i1 to vector<8x288xi1>
    %41 = vector.broadcast %40 : vector<8x288xi1> to vector<8x288xi1>
    %42 = arith.xori %38, %41 : vector<8x288xi1>
    %43 = arith.andi %42, %36 : vector<8x288xi1>
    %44 = vector.broadcast %32 : i32 to vector<8x288xi32>
    %45 = arith.addi %34, %44 : vector<8x288xi32>
    %46 = arith.select %43, %45, %34 : vector<8x288xi1>, vector<8x288xi32>
    %c16_i32 = arith.constant 16 : i32
    %47 = vector.broadcast %c16_i32 : i32 to vector<8x288xi32>
    %48 = arith.cmpi slt, %46, %47 : vector<8x288xi32>
    %cst_34 = arith.constant 0.000000e+00 : f32
    %49 = vector.broadcast %cst_34 : f32 to vector<8x288xf32>
    %50 = arith.select %48, %29, %49 : vector<8x288xi1>, vector<8x288xf32>
    %cst_35 = arith.constant dense<0.000000e+00> : vector<8xf32>
    %51 = vector.multi_reduction <add>, %50, %cst_35 [1] : vector<8x288xf32> to vector<8xf32>
    %52 = vector.shape_cast %51 : vector<8xf32> to vector<8x1xf32>
    %c0_36 = arith.constant 0 : index
    %c0_37 = arith.constant 0 : index
    %c0_38 = arith.constant 0 : index
    %53 = vector.load %arg5[%c0_36, %c0_37, %c0_38] : memref<1x8x1xf32, #tpu.memory_space<vmem>>, vector<1x8x1xf32>
    %54 = vector.shape_cast %53 : vector<1x8x1xf32> to vector<8x1xf32>
    %55 = vector.shape_cast %52 : vector<8x1xf32> to vector<1x8x1xf32>
    tpu.vector_store %arg5[%c0_36, %c0_37, %c0_38], %55 {strides = array<i32>} : memref<1x8x1xf32, #tpu.memory_space<vmem>>, vector<1x8x1xf32>,
    %56 = arith.mulf %50, %50 : vector<8x288xf32>
    %cst_39 = arith.constant dense<0.000000e+00> : vector<8xf32>
    %57 = vector.multi_reduction <add>, %56, %cst_39 [1] : vector<8x288xf32> to vector<8xf32>
    %58 = vector.shape_cast %57 : vector<8xf32> to vector<8x1xf32>
    %c0_40 = arith.constant 0 : index
    %c0_41 = arith.constant 0 : index
    %c0_42 = arith.constant 0 : index
    %59 = vector.load %arg6[%c0_40, %c0_41, %c0_42] : memref<1x8x1xf32, #tpu.memory_space<vmem>>, vector<1x8x1xf32>
    %60 = vector.shape_cast %59 : vector<1x8x1xf32> to vector<8x1xf32>
    %61 = vector.shape_cast %58 : vector<8x1xf32> to vector<1x8x1xf32>
    tpu.vector_store %arg6[%c0_40, %c0_41, %c0_42], %61 {strides = array<i32>} : memref<1x8x1xf32, #tpu.memory_space<vmem>>, vector<1x8x1xf32>,
    %cst_43 = arith.constant 0.000000e+00 : bf16
    %62 = vector.broadcast %cst_43 : bf16 to vector<8x512xbf16>
    %c0_44 = arith.constant 0 : index
    %c0_45 = arith.constant 0 : index
    %c0_46 = arith.constant 0 : index
    %63 = vector.load %arg4[%c0_44, %c0_45, %c0_46] : memref<1x8x512xbf16, #tpu.memory_space<vmem>>, vector<1x8x512xbf16>
    %64 = vector.shape_cast %63 : vector<1x8x512xbf16> to vector<8x512xbf16>
    %65 = vector.shape_cast %62 : vector<8x512xbf16> to vector<1x8x512xbf16>
    tpu.vector_store %arg4[%c0_44, %c0_45, %c0_46], %65 {strides = array<i32>} : memref<1x8x512xbf16, #tpu.memory_space<vmem>>, vector<1x8x512xbf16>,
    %66 = arith.truncf %50 : vector<8x288xf32> to vector<8x288xbf16>
    %c0_47 = arith.constant 0 : index
    %c0_48 = arith.constant 0 : index
    %c128_49 = arith.constant 128 : index
    %67 = vector.load %arg4[%c0_47, %c0_48, %c128_49] : memref<1x8x512xbf16, #tpu.memory_space<vmem>>, vector<1x8x288xbf16>
    %68 = vector.shape_cast %67 : vector<1x8x288xbf16> to vector<8x288xbf16>
    %69 = vector.shape_cast %66 : vector<8x288xbf16> to vector<1x8x288xbf16>
    tpu.vector_store %arg4[%c0_47, %c0_48, %c128_49], %69 {strides = array<i32>} : memref<1x8x512xbf16, #tpu.memory_space<vmem>>, vector<1x8x288xbf16>,
    %c16_50 = arith.constant 16 : index
    %c0_51 = arith.constant 0 : index
    %70 = vector.load %arg10[%c16_50, %c0_51] : memref<36x288xbf16, #tpu.memory_space<vmem>>, vector<4x288xbf16>
    %c0_52 = arith.constant 0 : index
    %c0_53 = arith.constant 0 : index
    %71 = vector.load %arg3[%c0_52, %c0_53] : memref<8x4xbf16, #tpu.memory_space<vmem>>, vector<8x4xbf16>
    %cst_54 = arith.constant dense<0.000000e+00> : vector<8x288xf32>
    %72 = tpu.matmul %71, %70, %cst_54 {dimension_numbers = #tpu.dot_dimension_numbers<[1], [0], [0], [1], [0, 0, 1, 1], [], []>} : vector<8x4xbf16>, vector<4x288xbf16>, vector<8x288xf32> -> vector<8x288xf32>
    %c16_i32_55 = arith.constant 16 : i32
    %73 = vector.broadcast %c16_i32_55 : i32 to vector<8x288xi32>
    %74 = arith.cmpi slt, %46, %73 : vector<8x288xi32>
    %cst_56 = arith.constant 0.000000e+00 : f32
    %75 = vector.broadcast %cst_56 : f32 to vector<8x288xf32>
    %76 = arith.select %74, %72, %75 : vector<8x288xi1>, vector<8x288xf32>
    %cst_57 = arith.constant dense<0.000000e+00> : vector<8xf32>
    %77 = vector.multi_reduction <add>, %76, %cst_57 [1] : vector<8x288xf32> to vector<8xf32>
    %78 = vector.shape_cast %77 : vector<8xf32> to vector<8x1xf32>
    %c0_58 = arith.constant 0 : index
    %c0_59 = arith.constant 0 : index
    %c0_60 = arith.constant 0 : index
    %79 = vector.load %arg8[%c0_58, %c0_59, %c0_60] : memref<1x8x1xf32, #tpu.memory_space<vmem>>, vector<1x8x1xf32>
    %80 = vector.shape_cast %79 : vector<1x8x1xf32> to vector<8x1xf32>
    %81 = vector.shape_cast %78 : vector<8x1xf32> to vector<1x8x1xf32>
    tpu.vector_store %arg8[%c0_58, %c0_59, %c0_60], %81 {strides = array<i32>} : memref<1x8x1xf32, #tpu.memory_space<vmem>>, vector<1x8x1xf32>,
    %82 = arith.mulf %76, %76 : vector<8x288xf32>
    %cst_61 = arith.constant dense<0.000000e+00> : vector<8xf32>
    %83 = vector.multi_reduction <add>, %82, %cst_61 [1] : vector<8x288xf32> to vector<8xf32>
    %84 = vector.shape_cast %83 : vector<8xf32> to vector<8x1xf32>
    %c0_62 = arith.constant 0 : index
    %c0_63 = arith.constant 0 : index
    %c0_64 = arith.constant 0 : index
    %85 = vector.load %arg9[%c0_62, %c0_63, %c0_64] : memref<1x8x1xf32, #tpu.memory_space<vmem>>, vector<1x8x1xf32>
    %86 = vector.shape_cast %85 : vector<1x8x1xf32> to vector<8x1xf32>
    %87 = vector.shape_cast %84 : vector<8x1xf32> to vector<1x8x1xf32>
    tpu.vector_store %arg9[%c0_62, %c0_63, %c0_64], %87 {strides = array<i32>} : memref<1x8x1xf32, #tpu.memory_space<vmem>>, vector<1x8x1xf32>,
    %c0_65 = arith.constant 0 : index
    %c0_66 = arith.constant 0 : index
    %c0_67 = arith.constant 0 : index
    %88 = vector.load %arg7[%c0_65, %c0_66, %c0_67] : memref<1x8x288xf32, #tpu.memory_space<vmem>>, vector<1x8x288xf32>
    %89 = vector.shape_cast %88 : vector<1x8x288xf32> to vector<8x288xf32>
    %90 = vector.shape_cast %76 : vector<8x288xf32> to vector<1x8x288xf32>
    tpu.vector_store %arg7[%c0_65, %c0_66, %c0_67], %90 {strides = array<i32>} : memref<1x8x288xf32, #tpu.memory_space<vmem>>, vector<1x8x288xf32>,
    return
  }
  func.func @transform_0(%arg0: i32) -> (i32, i32, i32) {
    %c0_i32 = arith.constant 0 : i32
    %c0_i32_0 = arith.constant 0 : i32
    %c0_i32_1 = arith.constant 0 : i32
    return %arg0, %c0_i32, %c0_i32_0 : i32, i32, i32
  }
  func.func @transform_1(%arg0: i32) -> (i32, i32) {
    %c0_i32 = arith.constant 0 : i32
    %c0_i32_0 = arith.constant 0 : i32
    %c0_i32_1 = arith.constant 0 : i32
    return %c0_i32, %c0_i32_0 : i32, i32
  }
  func.func @transform_2(%arg0: i32) -> (i32, i32) {
    %c0_i32 = arith.constant 0 : i32
    %c0_i32_0 = arith.constant 0 : i32
    %c0_i32_1 = arith.constant 0 : i32
    return %c0_i32, %c0_i32_0 : i32, i32
  }
  func.func @transform_3(%arg0: i32) -> (i32, i32, i32) {
    %c0_i32 = arith.constant 0 : i32
    %c0_i32_0 = arith.constant 0 : i32
    %c0_i32_1 = arith.constant 0 : i32
    return %arg0, %c0_i32, %c0_i32_0 : i32, i32, i32
  }
  func.func @transform_4(%arg0: i32) -> (i32, i32, i32) {
    %c0_i32 = arith.constant 0 : i32
    %c0_i32_0 = arith.constant 0 : i32
    %c0_i32_1 = arith.constant 0 : i32
    return %arg0, %c0_i32, %c0_i32_0 : i32, i32, i32
  }
  func.func @transform_5(%arg0: i32) -> (i32, i32, i32) {
    %c0_i32 = arith.constant 0 : i32
    %c0_i32_0 = arith.constant 0 : i32
    %c0_i32_1 = arith.constant 0 : i32
    return %arg0, %c0_i32, %c0_i32_0 : i32, i32, i32
  }
  func.func @transform_6(%arg0: i32) -> (i32, i32, i32) {
    %c0_i32 = arith.constant 0 : i32
    %c0_i32_0 = arith.constant 0 : i32
    %c0_i32_1 = arith.constant 0 : i32
    return %arg0, %c0_i32, %c0_i32_0 : i32, i32, i32
  }
  func.func @transform_7(%arg0: i32) -> (i32, i32, i32) {
    %c0_i32 = arith.constant 0 : i32
    %c0_i32_0 = arith.constant 0 : i32
    %c0_i32_1 = arith.constant 0 : i32
    return %arg0, %c0_i32, %c0_i32_0 : i32, i32, i32
  }
  func.func @transform_8(%arg0: i32) -> (i32, i32, i32) {
    %c0_i32 = arith.constant 0 : i32
    %c0_i32_0 = arith.constant 0 : i32
    %c0_i32_1 = arith.constant 0 : i32
    return %arg0, %c0_i32, %c0_i32_0 : i32, i32, i32
  }
}

module attributes {stable_mosaic.version = 11 : i64} {
  func.func @_conv2_kernel(%arg0: i32, %arg1: memref<1x8x512xbf16, #tpu.memory_space<vmem>>, %arg2: memref<8x72xbf16, #tpu.memory_space<vmem>>, %arg3: memref<8x1xf32, #tpu.memory_space<vmem>>, %arg4: memref<8x1xf32, #tpu.memory_space<vmem>>, %arg5: memref<1x8x288xf32, #tpu.memory_space<vmem>>, %arg6: memref<1x8x1xf32, #tpu.memory_space<vmem>>, %arg7: memref<1x8x1xf32, #tpu.memory_space<vmem>>, %arg8: memref<8x512xbf16, #tpu.memory_space<vmem>>, %arg9: memref<72x288xbf16, #tpu.memory_space<vmem>>) attributes {dimension_semantics = [#tpu.dimension_semantics<parallel>], iteration_bounds = array<i64: 2>, scalar_prefetch = 0 : i64, scratch_operands = 2 : i64, tpu.core_type = #tpu.core_type<tc>, window_params = [{transform_indices = @transform_0, window_bounds = array<i64: 1, 8, 512>}, {pipeline_mode = #tpu.pipeline_mode<synchronous>, transform_indices = @transform_1, window_bounds = array<i64: 8, 72>}, {pipeline_mode = #tpu.pipeline_mode<synchronous>, transform_indices = @transform_2, window_bounds = array<i64: 8, 1>}, {pipeline_mode = #tpu.pipeline_mode<synchronous>, transform_indices = @transform_3, window_bounds = array<i64: 8, 1>}, {transform_indices = @transform_4, window_bounds = array<i64: 1, 8, 288>}, {transform_indices = @transform_5, window_bounds = array<i64: 1, 8, 1>}, {transform_indices = @transform_6, window_bounds = array<i64: 1, 8, 1>}]} {
    %c0 = arith.constant 0 : index
    %c0_0 = arith.constant 0 : index
    %c0_1 = arith.constant 0 : index
    %0 = vector.load %arg1[%c0, %c0_0, %c0_1] : memref<1x8x512xbf16, #tpu.memory_space<vmem>>, vector<1x8x512xbf16>
    %1 = vector.shape_cast %0 : vector<1x8x512xbf16> to vector<8x512xbf16>
    %2 = arith.extf %1 : vector<8x512xbf16> to vector<8x512xf32>
    %3 = tpu.iota {dimensions = array<i32: 1>} : vector<8x512xi32>
    %c128_i32 = arith.constant 128 : i32
    %4 = vector.broadcast %c128_i32 : i32 to vector<8x512xi32>
    %5 = arith.subi %3, %4 : vector<8x512xi32>
    %c0_i32 = arith.constant 0 : i32
    %c287_i32 = arith.constant 287 : i32
    %6 = vector.broadcast %c0_i32 : i32 to vector<8x512xi32>
    %7 = arith.maxsi %6, %5 : vector<8x512xi32>
    %8 = vector.broadcast %c287_i32 : i32 to vector<8x512xi32>
    %9 = arith.minsi %8, %7 : vector<8x512xi32>
    %c0_i32_2 = arith.constant 0 : i32
    %10 = vector.broadcast %c0_i32_2 : i32 to vector<8x512xi32>
    %11 = arith.cmpi sge, %5, %10 : vector<8x512xi32>
    %c288_i32 = arith.constant 288 : i32
    %12 = vector.broadcast %c288_i32 : i32 to vector<8x512xi32>
    %13 = arith.cmpi slt, %5, %12 : vector<8x512xi32>
    %14 = arith.andi %11, %13 : vector<8x512xi1>
    %c18_i32 = arith.constant 18 : i32
    %c0_i32_3 = arith.constant 0 : i32
    %15 = arith.cmpi eq, %c18_i32, %c0_i32_3 : i32
    %c1_i32 = arith.constant 1 : i32
    %16 = arith.select %15, %c1_i32, %c18_i32 : i32
    %17 = vector.broadcast %16 : i32 to vector<8x512xi32>
    %18 = arith.remsi %9, %17 : vector<8x512xi32>
    %c0_i32_4 = arith.constant 0 : i32
    %19 = vector.broadcast %c0_i32_4 : i32 to vector<8x512xi32>
    %20 = arith.cmpi ne, %18, %19 : vector<8x512xi32>
    %c0_i32_5 = arith.constant 0 : i32
    %21 = vector.broadcast %c0_i32_5 : i32 to vector<8x512xi32>
    %22 = arith.cmpi slt, %18, %21 : vector<8x512xi32>
    %c0_i32_6 = arith.constant 0 : i32
    %23 = arith.cmpi slt, %16, %c0_i32_6 : i32
    %24 = vector.broadcast %23 : i1 to vector<8x512xi1>
    %25 = vector.broadcast %24 : vector<8x512xi1> to vector<8x512xi1>
    %26 = arith.xori %22, %25 : vector<8x512xi1>
    %27 = arith.andi %26, %20 : vector<8x512xi1>
    %28 = vector.broadcast %16 : i32 to vector<8x512xi32>
    %29 = arith.addi %18, %28 : vector<8x512xi32>
    %30 = arith.select %27, %29, %18 : vector<8x512xi1>, vector<8x512xi32>
    %c16_i32 = arith.constant 16 : i32
    %31 = vector.broadcast %c16_i32 : i32 to vector<8x512xi32>
    %32 = arith.cmpi slt, %30, %31 : vector<8x512xi32>
    %33 = arith.andi %14, %32 : vector<8x512xi1>
    %c0_7 = arith.constant 0 : index
    %c0_8 = arith.constant 0 : index
    %34 = vector.load %arg3[%c0_7, %c0_8] : memref<8x1xf32, #tpu.memory_space<vmem>>, vector<8x1xf32>
    %35 = vector.broadcast %34 : vector<8x1xf32> to vector<8x512xf32>
    %36 = arith.mulf %2, %35 : vector<8x512xf32>
    %c0_9 = arith.constant 0 : index
    %c0_10 = arith.constant 0 : index
    %37 = vector.load %arg4[%c0_9, %c0_10] : memref<8x1xf32, #tpu.memory_space<vmem>>, vector<8x1xf32>
    %38 = vector.broadcast %37 : vector<8x1xf32> to vector<8x512xf32>
    %39 = arith.addf %36, %38 : vector<8x512xf32>
    %cst = arith.constant 0.000000e+00 : f32
    %40 = vector.broadcast %cst : f32 to vector<8x512xf32>
    %41 = arith.maximumf %39, %40 : vector<8x512xf32>
    %cst_11 = arith.constant 0.000000e+00 : f32
    %42 = vector.broadcast %cst_11 : f32 to vector<8x512xf32>
    %43 = arith.select %33, %41, %42 : vector<8x512xi1>, vector<8x512xf32>
    %44 = arith.truncf %43 : vector<8x512xf32> to vector<8x512xbf16>
    %c0_12 = arith.constant 0 : index
    %c0_13 = arith.constant 0 : index
    %45 = vector.load %arg8[%c0_12, %c0_13] : memref<8x512xbf16, #tpu.memory_space<vmem>>, vector<8x512xbf16>
    tpu.vector_store %arg8[%c0_12, %c0_13], %44 {strides = array<i32>} : memref<8x512xbf16, #tpu.memory_space<vmem>>, vector<8x512xbf16>,
    %c0_14 = arith.constant 0 : index
    %c109 = arith.constant 109 : index
    %46 = vector.load %arg8[%c0_14, %c109] : memref<8x512xbf16, #tpu.memory_space<vmem>>, vector<8x288xbf16>
    %c0_15 = arith.constant 0 : index
    %c0_16 = arith.constant 0 : index
    %47 = vector.load %arg9[%c0_15, %c0_16] : memref<72x288xbf16, #tpu.memory_space<vmem>>, vector<8x288xbf16>
    tpu.vector_store %arg9[%c0_15, %c0_16], %46 {strides = array<i32>} : memref<72x288xbf16, #tpu.memory_space<vmem>>, vector<8x288xbf16>,
    %c0_17 = arith.constant 0 : index
    %c110 = arith.constant 110 : index
    %48 = vector.load %arg8[%c0_17, %c110] : memref<8x512xbf16, #tpu.memory_space<vmem>>, vector<8x288xbf16>
    %c8 = arith.constant 8 : index
    %c0_18 = arith.constant 0 : index
    %49 = vector.load %arg9[%c8, %c0_18] : memref<72x288xbf16, #tpu.memory_space<vmem>>, vector<8x288xbf16>
    tpu.vector_store %arg9[%c8, %c0_18], %48 {strides = array<i32>} : memref<72x288xbf16, #tpu.memory_space<vmem>>, vector<8x288xbf16>,
    %c0_19 = arith.constant 0 : index
    %c111 = arith.constant 111 : index
    %50 = vector.load %arg8[%c0_19, %c111] : memref<8x512xbf16, #tpu.memory_space<vmem>>, vector<8x288xbf16>
    %c16 = arith.constant 16 : index
    %c0_20 = arith.constant 0 : index
    %51 = vector.load %arg9[%c16, %c0_20] : memref<72x288xbf16, #tpu.memory_space<vmem>>, vector<8x288xbf16>
    tpu.vector_store %arg9[%c16, %c0_20], %50 {strides = array<i32>} : memref<72x288xbf16, #tpu.memory_space<vmem>>, vector<8x288xbf16>,
    %c0_21 = arith.constant 0 : index
    %c127 = arith.constant 127 : index
    %52 = vector.load %arg8[%c0_21, %c127] : memref<8x512xbf16, #tpu.memory_space<vmem>>, vector<8x288xbf16>
    %c24 = arith.constant 24 : index
    %c0_22 = arith.constant 0 : index
    %53 = vector.load %arg9[%c24, %c0_22] : memref<72x288xbf16, #tpu.memory_space<vmem>>, vector<8x288xbf16>
    tpu.vector_store %arg9[%c24, %c0_22], %52 {strides = array<i32>} : memref<72x288xbf16, #tpu.memory_space<vmem>>, vector<8x288xbf16>,
    %c0_23 = arith.constant 0 : index
    %c128 = arith.constant 128 : index
    %54 = vector.load %arg8[%c0_23, %c128] : memref<8x512xbf16, #tpu.memory_space<vmem>>, vector<8x288xbf16>
    %c32 = arith.constant 32 : index
    %c0_24 = arith.constant 0 : index
    %55 = vector.load %arg9[%c32, %c0_24] : memref<72x288xbf16, #tpu.memory_space<vmem>>, vector<8x288xbf16>
    tpu.vector_store %arg9[%c32, %c0_24], %54 {strides = array<i32>} : memref<72x288xbf16, #tpu.memory_space<vmem>>, vector<8x288xbf16>,
    %c0_25 = arith.constant 0 : index
    %c129 = arith.constant 129 : index
    %56 = vector.load %arg8[%c0_25, %c129] : memref<8x512xbf16, #tpu.memory_space<vmem>>, vector<8x288xbf16>
    %c40 = arith.constant 40 : index
    %c0_26 = arith.constant 0 : index
    %57 = vector.load %arg9[%c40, %c0_26] : memref<72x288xbf16, #tpu.memory_space<vmem>>, vector<8x288xbf16>
    tpu.vector_store %arg9[%c40, %c0_26], %56 {strides = array<i32>} : memref<72x288xbf16, #tpu.memory_space<vmem>>, vector<8x288xbf16>,
    %c0_27 = arith.constant 0 : index
    %c145 = arith.constant 145 : index
    %58 = vector.load %arg8[%c0_27, %c145] : memref<8x512xbf16, #tpu.memory_space<vmem>>, vector<8x288xbf16>
    %c48 = arith.constant 48 : index
    %c0_28 = arith.constant 0 : index
    %59 = vector.load %arg9[%c48, %c0_28] : memref<72x288xbf16, #tpu.memory_space<vmem>>, vector<8x288xbf16>
    tpu.vector_store %arg9[%c48, %c0_28], %58 {strides = array<i32>} : memref<72x288xbf16, #tpu.memory_space<vmem>>, vector<8x288xbf16>,
    %c0_29 = arith.constant 0 : index
    %c146 = arith.constant 146 : index
    %60 = vector.load %arg8[%c0_29, %c146] : memref<8x512xbf16, #tpu.memory_space<vmem>>, vector<8x288xbf16>
    %c56 = arith.constant 56 : index
    %c0_30 = arith.constant 0 : index
    %61 = vector.load %arg9[%c56, %c0_30] : memref<72x288xbf16, #tpu.memory_space<vmem>>, vector<8x288xbf16>
    tpu.vector_store %arg9[%c56, %c0_30], %60 {strides = array<i32>} : memref<72x288xbf16, #tpu.memory_space<vmem>>, vector<8x288xbf16>,
    %c0_31 = arith.constant 0 : index
    %c147 = arith.constant 147 : index
    %62 = vector.load %arg8[%c0_31, %c147] : memref<8x512xbf16, #tpu.memory_space<vmem>>, vector<8x288xbf16>
    %c64 = arith.constant 64 : index
    %c0_32 = arith.constant 0 : index
    %63 = vector.load %arg9[%c64, %c0_32] : memref<72x288xbf16, #tpu.memory_space<vmem>>, vector<8x288xbf16>
    tpu.vector_store %arg9[%c64, %c0_32], %62 {strides = array<i32>} : memref<72x288xbf16, #tpu.memory_space<vmem>>, vector<8x288xbf16>,
    %c0_33 = arith.constant 0 : index
    %c0_34 = arith.constant 0 : index
    %64 = vector.load %arg2[%c0_33, %c0_34] : memref<8x72xbf16, #tpu.memory_space<vmem>>, vector<8x72xbf16>
    %c0_35 = arith.constant 0 : index
    %c0_36 = arith.constant 0 : index
    %65 = vector.load %arg9[%c0_35, %c0_36] : memref<72x288xbf16, #tpu.memory_space<vmem>>, vector<72x288xbf16>
    %cst_37 = arith.constant dense<0.000000e+00> : vector<8x288xf32>
    %66 = tpu.matmul %64, %65, %cst_37 {dimension_numbers = #tpu.dot_dimension_numbers<[1], [0], [0], [1], [0, 0, 1, 1], [], []>} : vector<8x72xbf16>, vector<72x288xbf16>, vector<8x288xf32> -> vector<8x288xf32>
    %c0_38 = arith.constant 0 : index
    %c0_39 = arith.constant 0 : index
    %c0_40 = arith.constant 0 : index
    %67 = vector.load %arg5[%c0_38, %c0_39, %c0_40] : memref<1x8x288xf32, #tpu.memory_space<vmem>>, vector<1x8x288xf32>
    %68 = vector.shape_cast %67 : vector<1x8x288xf32> to vector<8x288xf32>
    %69 = vector.shape_cast %66 : vector<8x288xf32> to vector<1x8x288xf32>
    tpu.vector_store %arg5[%c0_38, %c0_39, %c0_40], %69 {strides = array<i32>} : memref<1x8x288xf32, #tpu.memory_space<vmem>>, vector<1x8x288xf32>,
    %70 = tpu.iota {dimensions = array<i32: 1>} : vector<8x288xi32>
    %c18_i32_41 = arith.constant 18 : i32
    %c0_i32_42 = arith.constant 0 : i32
    %71 = arith.cmpi eq, %c18_i32_41, %c0_i32_42 : i32
    %c1_i32_43 = arith.constant 1 : i32
    %72 = arith.select %71, %c1_i32_43, %c18_i32_41 : i32
    %73 = vector.broadcast %72 : i32 to vector<8x288xi32>
    %74 = arith.remsi %70, %73 : vector<8x288xi32>
    %c0_i32_44 = arith.constant 0 : i32
    %75 = vector.broadcast %c0_i32_44 : i32 to vector<8x288xi32>
    %76 = arith.cmpi ne, %74, %75 : vector<8x288xi32>
    %c0_i32_45 = arith.constant 0 : i32
    %77 = vector.broadcast %c0_i32_45 : i32 to vector<8x288xi32>
    %78 = arith.cmpi slt, %74, %77 : vector<8x288xi32>
    %c0_i32_46 = arith.constant 0 : i32
    %79 = arith.cmpi slt, %72, %c0_i32_46 : i32
    %80 = vector.broadcast %79 : i1 to vector<8x288xi1>
    %81 = vector.broadcast %80 : vector<8x288xi1> to vector<8x288xi1>
    %82 = arith.xori %78, %81 : vector<8x288xi1>
    %83 = arith.andi %82, %76 : vector<8x288xi1>
    %84 = vector.broadcast %72 : i32 to vector<8x288xi32>
    %85 = arith.addi %74, %84 : vector<8x288xi32>
    %86 = arith.select %83, %85, %74 : vector<8x288xi1>, vector<8x288xi32>
    %c16_i32_47 = arith.constant 16 : i32
    %87 = vector.broadcast %c16_i32_47 : i32 to vector<8x288xi32>
    %88 = arith.cmpi slt, %86, %87 : vector<8x288xi32>
    %cst_48 = arith.constant 0.000000e+00 : f32
    %89 = vector.broadcast %cst_48 : f32 to vector<8x288xf32>
    %90 = arith.select %88, %66, %89 : vector<8x288xi1>, vector<8x288xf32>
    %cst_49 = arith.constant dense<0.000000e+00> : vector<8xf32>
    %91 = vector.multi_reduction <add>, %90, %cst_49 [1] : vector<8x288xf32> to vector<8xf32>
    %92 = vector.shape_cast %91 : vector<8xf32> to vector<8x1xf32>
    %c0_50 = arith.constant 0 : index
    %c0_51 = arith.constant 0 : index
    %c0_52 = arith.constant 0 : index
    %93 = vector.load %arg6[%c0_50, %c0_51, %c0_52] : memref<1x8x1xf32, #tpu.memory_space<vmem>>, vector<1x8x1xf32>
    %94 = vector.shape_cast %93 : vector<1x8x1xf32> to vector<8x1xf32>
    %95 = vector.shape_cast %92 : vector<8x1xf32> to vector<1x8x1xf32>
    tpu.vector_store %arg6[%c0_50, %c0_51, %c0_52], %95 {strides = array<i32>} : memref<1x8x1xf32, #tpu.memory_space<vmem>>, vector<1x8x1xf32>,
    %96 = arith.mulf %90, %90 : vector<8x288xf32>
    %cst_53 = arith.constant dense<0.000000e+00> : vector<8xf32>
    %97 = vector.multi_reduction <add>, %96, %cst_53 [1] : vector<8x288xf32> to vector<8xf32>
    %98 = vector.shape_cast %97 : vector<8xf32> to vector<8x1xf32>
    %c0_54 = arith.constant 0 : index
    %c0_55 = arith.constant 0 : index
    %c0_56 = arith.constant 0 : index
    %99 = vector.load %arg7[%c0_54, %c0_55, %c0_56] : memref<1x8x1xf32, #tpu.memory_space<vmem>>, vector<1x8x1xf32>
    %100 = vector.shape_cast %99 : vector<1x8x1xf32> to vector<8x1xf32>
    %101 = vector.shape_cast %98 : vector<8x1xf32> to vector<1x8x1xf32>
    tpu.vector_store %arg7[%c0_54, %c0_55, %c0_56], %101 {strides = array<i32>} : memref<1x8x1xf32, #tpu.memory_space<vmem>>, vector<1x8x1xf32>,
    return
  }
  func.func @transform_0(%arg0: i32) -> (i32, i32, i32) {
    %c0_i32 = arith.constant 0 : i32
    %c0_i32_0 = arith.constant 0 : i32
    %c0_i32_1 = arith.constant 0 : i32
    return %arg0, %c0_i32, %c0_i32_0 : i32, i32, i32
  }
  func.func @transform_1(%arg0: i32) -> (i32, i32) {
    %c0_i32 = arith.constant 0 : i32
    %c0_i32_0 = arith.constant 0 : i32
    %c0_i32_1 = arith.constant 0 : i32
    return %c0_i32, %c0_i32_0 : i32, i32
  }
  func.func @transform_2(%arg0: i32) -> (i32, i32) {
    %c0_i32 = arith.constant 0 : i32
    %c0_i32_0 = arith.constant 0 : i32
    %c0_i32_1 = arith.constant 0 : i32
    return %c0_i32, %c0_i32_0 : i32, i32
  }
  func.func @transform_3(%arg0: i32) -> (i32, i32) {
    %c0_i32 = arith.constant 0 : i32
    %c0_i32_0 = arith.constant 0 : i32
    %c0_i32_1 = arith.constant 0 : i32
    return %c0_i32, %c0_i32_0 : i32, i32
  }
  func.func @transform_4(%arg0: i32) -> (i32, i32, i32) {
    %c0_i32 = arith.constant 0 : i32
    %c0_i32_0 = arith.constant 0 : i32
    %c0_i32_1 = arith.constant 0 : i32
    return %arg0, %c0_i32, %c0_i32_0 : i32, i32, i32
  }
  func.func @transform_5(%arg0: i32) -> (i32, i32, i32) {
    %c0_i32 = arith.constant 0 : i32
    %c0_i32_0 = arith.constant 0 : i32
    %c0_i32_1 = arith.constant 0 : i32
    return %arg0, %c0_i32, %c0_i32_0 : i32, i32, i32
  }
  func.func @transform_6(%arg0: i32) -> (i32, i32, i32) {
    %c0_i32 = arith.constant 0 : i32
    %c0_i32_0 = arith.constant 0 : i32
    %c0_i32_1 = arith.constant 0 : i32
    return %arg0, %c0_i32, %c0_i32_0 : i32, i32, i32
  }
}

module attributes {stable_mosaic.version = 11 : i64} {
  func.func @_bn_add_relu_ds_kernel(%arg0: i32, %arg1: memref<1x8x288xf32, #tpu.memory_space<vmem>>, %arg2: memref<8x1xf32, #tpu.memory_space<vmem>>, %arg3: memref<8x1xf32, #tpu.memory_space<vmem>>, %arg4: memref<1x8x288xf32, #tpu.memory_space<vmem>>, %arg5: memref<8x1xf32, #tpu.memory_space<vmem>>, %arg6: memref<8x1xf32, #tpu.memory_space<vmem>>, %arg7: memref<1x8x288xf32, #tpu.memory_space<vmem>>) attributes {dimension_semantics = [#tpu.dimension_semantics<parallel>], iteration_bounds = array<i64: 2>, scalar_prefetch = 0 : i64, scratch_operands = 0 : i64, tpu.core_type = #tpu.core_type<tc>, window_params = [{transform_indices = @transform_0, window_bounds = array<i64: 1, 8, 288>}, {pipeline_mode = #tpu.pipeline_mode<synchronous>, transform_indices = @transform_1, window_bounds = array<i64: 8, 1>}, {pipeline_mode = #tpu.pipeline_mode<synchronous>, transform_indices = @transform_2, window_bounds = array<i64: 8, 1>}, {transform_indices = @transform_3, window_bounds = array<i64: 1, 8, 288>}, {pipeline_mode = #tpu.pipeline_mode<synchronous>, transform_indices = @transform_4, window_bounds = array<i64: 8, 1>}, {pipeline_mode = #tpu.pipeline_mode<synchronous>, transform_indices = @transform_5, window_bounds = array<i64: 8, 1>}, {transform_indices = @transform_6, window_bounds = array<i64: 1, 8, 288>}]} {
    %c0 = arith.constant 0 : index
    %c0_0 = arith.constant 0 : index
    %c0_1 = arith.constant 0 : index
    %0 = vector.load %arg1[%c0, %c0_0, %c0_1] : memref<1x8x288xf32, #tpu.memory_space<vmem>>, vector<1x8x288xf32>
    %1 = vector.shape_cast %0 : vector<1x8x288xf32> to vector<8x288xf32>
    %c0_2 = arith.constant 0 : index
    %c0_3 = arith.constant 0 : index
    %2 = vector.load %arg2[%c0_2, %c0_3] : memref<8x1xf32, #tpu.memory_space<vmem>>, vector<8x1xf32>
    %3 = vector.broadcast %2 : vector<8x1xf32> to vector<8x288xf32>
    %4 = arith.mulf %1, %3 : vector<8x288xf32>
    %c0_4 = arith.constant 0 : index
    %c0_5 = arith.constant 0 : index
    %5 = vector.load %arg3[%c0_4, %c0_5] : memref<8x1xf32, #tpu.memory_space<vmem>>, vector<8x1xf32>
    %6 = vector.broadcast %5 : vector<8x1xf32> to vector<8x288xf32>
    %7 = arith.addf %4, %6 : vector<8x288xf32>
    %c0_6 = arith.constant 0 : index
    %c0_7 = arith.constant 0 : index
    %c0_8 = arith.constant 0 : index
    %8 = vector.load %arg4[%c0_6, %c0_7, %c0_8] : memref<1x8x288xf32, #tpu.memory_space<vmem>>, vector<1x8x288xf32>
    %9 = vector.shape_cast %8 : vector<1x8x288xf32> to vector<8x288xf32>
    %c0_9 = arith.constant 0 : index
    %c0_10 = arith.constant 0 : index
    %10 = vector.load %arg5[%c0_9, %c0_10] : memref<8x1xf32, #tpu.memory_space<vmem>>, vector<8x1xf32>
    %11 = vector.broadcast %10 : vector<8x1xf32> to vector<8x288xf32>
    %12 = arith.mulf %9, %11 : vector<8x288xf32>
    %c0_11 = arith.constant 0 : index
    %c0_12 = arith.constant 0 : index
    %13 = vector.load %arg6[%c0_11, %c0_12] : memref<8x1xf32, #tpu.memory_space<vmem>>, vector<8x1xf32>
    %14 = vector.broadcast %13 : vector<8x1xf32> to vector<8x288xf32>
    %15 = arith.addf %12, %14 : vector<8x288xf32>
    %16 = arith.addf %7, %15 : vector<8x288xf32>
    %cst = arith.constant 0.000000e+00 : f32
    %17 = vector.broadcast %cst : f32 to vector<8x288xf32>
    %18 = arith.maximumf %16, %17 : vector<8x288xf32>
    %c0_13 = arith.constant 0 : index
    %c0_14 = arith.constant 0 : index
    %c0_15 = arith.constant 0 : index
    %19 = vector.load %arg7[%c0_13, %c0_14, %c0_15] : memref<1x8x288xf32, #tpu.memory_space<vmem>>, vector<1x8x288xf32>
    %20 = vector.shape_cast %19 : vector<1x8x288xf32> to vector<8x288xf32>
    %21 = vector.shape_cast %18 : vector<8x288xf32> to vector<1x8x288xf32>
    tpu.vector_store %arg7[%c0_13, %c0_14, %c0_15], %21 {strides = array<i32>} : memref<1x8x288xf32, #tpu.memory_space<vmem>>, vector<1x8x288xf32>,
    return
  }
  func.func @transform_0(%arg0: i32) -> (i32, i32, i32) {
    %c0_i32 = arith.constant 0 : i32
    %c0_i32_0 = arith.constant 0 : i32
    %c0_i32_1 = arith.constant 0 : i32
    return %arg0, %c0_i32, %c0_i32_0 : i32, i32, i32
  }
  func.func @transform_1(%arg0: i32) -> (i32, i32) {
    %c0_i32 = arith.constant 0 : i32
    %c0_i32_0 = arith.constant 0 : i32
    %c0_i32_1 = arith.constant 0 : i32
    return %c0_i32, %c0_i32_0 : i32, i32
  }
  func.func @transform_2(%arg0: i32) -> (i32, i32) {
    %c0_i32 = arith.constant 0 : i32
    %c0_i32_0 = arith.constant 0 : i32
    %c0_i32_1 = arith.constant 0 : i32
    return %c0_i32, %c0_i32_0 : i32, i32
  }
  func.func @transform_3(%arg0: i32) -> (i32, i32, i32) {
    %c0_i32 = arith.constant 0 : i32
    %c0_i32_0 = arith.constant 0 : i32
    %c0_i32_1 = arith.constant 0 : i32
    return %arg0, %c0_i32, %c0_i32_0 : i32, i32, i32
  }
  func.func @transform_4(%arg0: i32) -> (i32, i32) {
    %c0_i32 = arith.constant 0 : i32
    %c0_i32_0 = arith.constant 0 : i32
    %c0_i32_1 = arith.constant 0 : i32
    return %c0_i32, %c0_i32_0 : i32, i32
  }
  func.func @transform_5(%arg0: i32) -> (i32, i32) {
    %c0_i32 = arith.constant 0 : i32
    %c0_i32_0 = arith.constant 0 : i32
    %c0_i32_1 = arith.constant 0 : i32
    return %c0_i32, %c0_i32_0 : i32, i32
  }
  func.func @transform_6(%arg0: i32) -> (i32, i32, i32) {
    %c0_i32 = arith.constant 0 : i32
    %c0_i32_0 = arith.constant 0 : i32
    %c0_i32_1 = arith.constant 0 : i32
    return %arg0, %c0_i32, %c0_i32_0 : i32, i32, i32
  }
}

</mosaic_0001>

<bundles_post_ra>
// kernel: res_block_forward.5
= control target key start
LH: loop header
LB: loop body
LE: loop exit
PB: predicated region body
PF: predicated region fallthrough
CT: control target
= control target key end

     0   :  { %s457_s21 = smov 0   ;;  %s494_s0 = inlined_call_operand.vmem [shape: f32[2,8,288], index: 0, kind: input, shape index: {}]   ;;  %s495_s1 = inlined_call_operand.vmem [shape: f32[8,1], index: 1, kind: input, shape index: {}]   ;;  %s496_s2 = inlined_call_operand.vmem [shape: f32[8,1], index: 2, kind: input, shape index: {}]   ;;  %s497_s3 = inlined_call_operand.vmem [shape: f32[2,8,288], index: 3, kind: input, shape index: {}]   ;;  %s498_s4 = inlined_call_operand.vmem [shape: f32[8,1], index: 4, kind: input, shape index: {}]   ;;  %s499_s5 = inlined_call_operand.vmem [shape: f32[8,1], index: 5, kind: input, shape index: {}]   ;;  %s500_s6 = inlined_call_operand.vmem [shape: f32[2,8,288], index: 6, kind: output, shape index: {}]  }
   0x1 LB: > { %s391_s22 = sadd.s32 4294967295, %s419_s21   ;;  %p395_p0 = scmp.ge.s32.totalorder %s419_s21, 1  ;;  %s419_s21 = sphi %s457_s21, %s16_s21  }
   0x2   : > { %p222_p1 = scmp.lt.s32.totalorder %s419_s21, 3 }
   0x4   : > { %p223_p2 = pnand %p395_p0, %p222_p1 }
   0x5   : > { %v284_v0 = vld [vmem:[%s496_s2] sm:$0xff] (!%p223_p2)  ;;  %v421_v2 = vmov (!%p223_p2), 0   ;;  %p257_p3 = scmp.lt.s32.totalorder (!%p223_p2), %s391_s22, 1  ;;  %vm322_vm0 = vcmask (!%p223_p2), 261120  }
   0x6   : > { %226 = sbr.rel (%p223_p2) target bundleno = 149 (0x95), region = 44  ;;  %v275_v1 = vld [vmem:[%s495_s1] sm:$0xff] (!%p223_p2)  ;;  %412 = vset.pattern.permute.xlu1 (!%p223_p2), %v421_v2  ;;  %411 = vset.pattern.permute.xlu0 (!%p223_p2), %v421_v2 }
   0x7   : > { %287 = vperm.xlu1 (!%p223_p2), %412, %v284_v0   ;;  %278 = vperm.xlu0 (!%p223_p2), %411, %v275_v1   ;;  %v305_v3 = vld [vmem:[%s499_s5] sm:$0xff] (!%p223_p2) }
   0x8   : > { %v296_v4 = vld [vmem:[%s498_s4] sm:$0xff] (!%p223_p2) }
   0xb   : > { %308 = vperm.xlu1 (!%p223_p2), %412, %v305_v3   ;;  %299 = vperm.xlu0 (!%p223_p2), %411, %v296_v4  }
   0xd   : > { %s502_s22 = smov (!%p257_p3, %s391_s22), 1 }
   0xe   : > { %s477_s7 = smul.u32 24, %s502_s22 }
  0x10   : > { %s261_s10 = scalar_lea.vmem %s494_s0, %s477_s7  ;;  %s266_s13 = scalar_lea.vmem %s497_s3, %s477_s7 }
  0x11   : > { %v272_v5 = vld [vmem:[%s261_s10] sm:$0xff]  ;;  %v273_v6 = vld [vmem:[%s261_s10 + $0x8] sm:$0xff]  ;;  %v274_v9 = vld [vmem:[%s261_s10 + $0x10] sm:$0xff]  ;;  %s271_s16 = scalar_lea.vmem %s500_s6, %s477_s7 }
  0x12   : > { %v293_v12 = vld [vmem:[%s266_s13] sm:$0xff]  ;;  %v294_v13 = vld [vmem:[%s266_s13 + $0x8] sm:$0xff]  ;;  %v295_v14 = vld [vmem:[%s266_s13 + $0x10] sm:$0xff] }
  0x86   : > { %v288_v7 = vpop.permute.xlu1 %287  ;;  %v279_v8 = vpop.permute.xlu0 %278 }
  0x87   : > { %v281_v10 = vmul.f32 %v279_v8, %v272_v5  ;;  %v282_v11 = vmul.f32 %v279_v8, %v273_v6  ;;  %v283_v15 = vmul.f32 %v279_v8, %v274_v9 }
  0x89   : > { %v290_v20 = vadd.f32 %v288_v7, %v281_v10  ;;  %v291_v21 = vadd.f32 %v288_v7, %v282_v11  ;;  %v292_v23 = vadd.f32 %v288_v7, %v283_v15 }
  0x8a   : > { %v300_v16 = vpop.permute.xlu0 %299  ;;  %v309_v22 = vpop.permute.xlu1 %308 }
  0x8b   : > { %v302_v17 = vmul.f32 %v300_v16, %v293_v12  ;;  %v303_v18 = vmul.f32 %v300_v16, %v294_v13  ;;  %v304_v19 = vmul.f32 %v300_v16, %v295_v14 }
  0x8d   : > { %v311_v24 = vadd.f32 %v309_v22, %v302_v17  ;;  %v312_v25 = vadd.f32 %v309_v22, %v303_v18  ;;  %v313_v26 = vadd.f32 %v309_v22, %v304_v19 }
  0x8f   : > { %v314_v27 = vadd.f32 %v311_v24, %v290_v20  ;;  %v315_v28 = vadd.f32 %v312_v25, %v291_v21  ;;  %v316_v29 = vadd.f32 %v313_v26, %v292_v23 }
  0x91   : > { %v317_v30 = vmax.f32 %v314_v27, 0.0  ;;  %v318_v31 = vmax.f32 %v315_v28, 0.0  ;;  %v319_v32 = vmax.f32 %v316_v29, 0.0 }
  0x93   : > { %320 = vst [vmem:[%s271_s16] sm:$0xff] %v317_v30  ;;  %321 = vst [vmem:[%s271_s16 + $0x8] sm:$0xff] %v318_v31 }
  0x94   : > { %323 = vst.msk [vmem:[%s271_s16 + $0x10] sm:$0xff] %vm322_vm0, %v319_v32 }
  0x95 PF: > { %s16_s21 = sadd.s32 1, %s419_s21  }
  0x96   : > { %p13_p4 = scmp.ge.s32.totalorder %s16_s21, 4  }
  0x98   :  { %15 = sbr.rel (!%p13_p4) target bundleno = 1 (0x1), region = 77 }

// kernel: res_block_forward.4
= control target key start
LH: loop header
LB: loop body
LE: loop exit
PB: predicated region body
PF: predicated region fallthrough
CT: control target
= control target key end

     0   :  { %s1109_s21 = smov 0   ;;  %s1248_s0 = inlined_call_operand.vmem [shape: bf16[2,8,512], index: 0, kind: input, shape index: {}]   ;;  %s1249_s1 = inlined_call_operand.vmem [shape: bf16[8,72], index: 1, kind: input, shape index: {}]   ;;  %s1250_s2 = inlined_call_operand.vmem [shape: f32[8,1], index: 2, kind: input, shape index: {}]   ;;  %s1251_s3 = inlined_call_operand.vmem [shape: f32[8,1], index: 3, kind: input, shape index: {}]   ;;  %s1252_s4 = inlined_call_operand.vmem [shape: f32[2,8,288], index: 4, kind: output, shape index: {0}]   ;;  %s1253_s5 = inlined_call_operand.vmem [shape: f32[2,8,1], index: 5, kind: output, shape index: {1}]   ;;  %s1254_s6 = inlined_call_operand.vmem [shape: f32[2,8,1], index: 6, kind: output, shape index: {2}]  }
   0x1 LB: > { %s957_s22 = sadd.s32 4294967295, %s1060_s21   ;;  %p961_p0 = scmp.ge.s32.totalorder %s1060_s21, 1  ;;  %s1060_s21 = sphi %s1109_s21, %s17_s21  }
   0x2   : > { %p217_p1 = scmp.lt.s32.totalorder %s1060_s21, 3 }
   0x4   : > { %p218_p2 = pnand %p961_p0, %p217_p1 }
   0x5   : > { %v387_v0 = vld [vmem:[%s1250_s2] sm:$0xff] (!%p218_p2)  ;;  %v1062_v1 = vmov (!%p218_p2), 0   ;;  %v280_v3 = vlaneseq (!%p218_p2)  ;;  %p255_p3 = scmp.lt.s32.totalorder (!%p218_p2), %s957_s22, 1  ;;  %v1063_v59 = vmov (!%p218_p2), 0.0|0.0   ;;  %s1064_s7 = smov (!%p218_p2), 19   ;;  %v1066_v61 = vmov (!%p218_p2), 0.0  }
   0x6   : > { %221 = sbr.rel (%p218_p2) target bundleno = 666 (0x29a), region = 36  ;;  %1048 = vset.pattern.permute.xlu0 (!%p218_p2), %v1062_v1  ;;  %716 = vmatprep.mubr.bf16.mxu0 (!%p218_p2), %v1062_v1  ;;  %v397_v2 = vld [vmem:[%s1251_s3] sm:$0xff] (!%p218_p2)  ;;  %s1065_s8 = smov (!%p218_p2), 18  }
   0x7   : > { %390 = vperm.xlu0 (!%p218_p2), %1048, %v387_v0   ;;  %v1123_v4 = vand.u32 (!%p218_p2), 127, %v280_v3  ;;  %1001 = vmatprep.subr.bf16.mxu1 (!%p218_p2), %v1066_v61  ;;  %s1067_s9 = smov (!%p218_p2), 17   ;;  %s1068_s10 = smov (!%p218_p2), 1  }
   0x8   : > { %s1069_s11 = smov (!%p218_p2), 127   ;;  %s1070_s12 = smov (!%p218_p2), 111  }
   0x9   : > { %v283_v5 = vadd.s32 (!%p218_p2), 384, %v1123_v4  ;;  %v1134_v12 = vadd.s32 (!%p218_p2), 256, %v1123_v4  ;;  %vm289_vm1 = vcmp.gt.s32.totalorder (!%p218_p2), %v1123_v4, 0  ;;  %s1071_s13 = smov (!%p218_p2), 110   ;;  %s1072_s14 = smov (!%p218_p2), 109  }
   0xa   : > { %v290_v14 = vsel (!%p218_p2), %vm289_vm1, %v1123_v4, 0  ;;  %vm451_vm1 = vcmask (!%p218_p2), 257024  }
   0xb   : > { %400 = vperm.xlu0 (!%p218_p2), %1048, %v397_v2   ;;  %v1126_v6 = vadd.s32 (!%p218_p2), 4294967168, %v283_v5  ;;  %v968_v13 = vadd.s32 (!%p218_p2), 4294967168, %v1134_v12  ;;  %v1139_v15 = vmul.u32.u64.low (!%p218_p2), 3817748708, %v290_v14  ;;  %v1140_v16 = vmul.u32.u64.high 3817748708, %v290_v14, %v1139_v15 }
   0xd   : > { %vm301_vm0 = vcmp.lt.s32.totalorder %v1126_v6, 287  ;;  %v1143_v18 = vmul.u32.u64.low 3817748708, %v968_v13  ;;  %v1144_v19 = vmul.u32.u64.high 3817748708, %v968_v13, %v1143_v18  ;;  %v332_v21 = vshrl.u32 %v1140_v16, 4  ;;  %s1260_s22 = smov (!%p255_p3, %s957_s22), 1 }
   0xe   : > { %v302_v7 = vsel %vm301_vm0, %v1126_v6, 287  ;;  %s993_s27 = sshll.u32 %s1260_s22, 4  ;;  %vm310_vm12 = vcmp.lt.s32.totalorder %v1126_v6, 288  ;;  %s1015_s17 = smul.u32 24, %s1260_s22 }
   0xf   : > { %v349_v8 = vsub.s32 0, %v302_v7  ;;  %v343_v23 = vshrl.u32 %v1144_v19, 4  ;;  %v333_v24 = vmul.u32 18, %v332_v21  ;;  %vm348_vm2 = vcmp.lt.s32.totalorder %v302_v7, 0  ;;  %s259_s30 = scalar_lea.vmem %s1248_s0, %s993_s27  ;;  %s965_s23 = sshll.u32 %s1260_s22, 3 }
  0x10   : > { %v274_v30 = vld [vmem:[%s259_s30] sm:$0xff]  ;;  %v275_v31 = vld [vmem:[%s259_s30 + $0x8] sm:$0xff]  ;;  %s264_s20 = scalar_lea.vmem %s1252_s4, %s1015_s17  ;;  %s268_s26 = scalar_lea.vmem %s1253_s5, %s965_s23 }
  0x11   : > { %v970_v9 = vmin.u32 %v349_v8, %v302_v7  ;;  %v344_v26 = vmul.u32 18, %v343_v23  ;;  %v334_v27 = vsub.s32 %v290_v14, %v333_v24  ;;  %v277_v37 = vunpack.c.h.bf16 %v274_v30  ;;  %s272_s29 = scalar_lea.vmem %s1254_s6, %s965_s23 }
  0x12   : > { %v278_v38 = vunpack.c.l.bf16 %v275_v31  ;;  %v279_v39 = vunpack.c.h.bf16 %v275_v31 }
  0x13   : > { %v1130_v10 = vmul.u32.u64.low 3817748708, %v970_v9  ;;  %v1131_v11 = vmul.u32.u64.high 3817748708, %v970_v9, %v1130_v10  ;;  %v345_v29 = vsub.s32 %v968_v13, %v344_v26  ;;  %vm360_vm5 = vcmp.ne.s32.totalorder %v334_v27, 0 }
  0x14   : > { %vm364_vm6 = vcmp.lt.s32.totalorder %v334_v27, 0  ;;  %v372_v35 = vadd.s32 18, %v334_v27 }
  0x15   : > { %v354_v17 = vshrl.u32 %v1131_v11, 4  ;;  %vm361_vm7 = vcmp.ne.s32.totalorder %v345_v29, 0  ;;  %vm365_vm8 = vcmp.lt.s32.totalorder %v345_v29, 0  ;;  %vm1162_vm10 = vmand %vm364_vm6, %vm360_vm5  ;;  %v373_v36 = vadd.s32 18, %v345_v29 }
  0x16   : > { %vm369_vm11 = vmand %vm365_vm8, %vm361_vm7  ;;  %v376_v42 = vsel %vm1162_vm10, %v372_v35, %v334_v27  ;;  %vm464_vm5 = vcmask 146432   ;;  %vm482_vm6 = vcmask 138240   ;;  %vm500_vm7 = vcmask 7168  }
  0x17   : > { %v355_v20 = vmul.u32 18, %v354_v17  ;;  %v377_v43 = vsel %vm369_vm11, %v373_v36, %v345_v29  ;;  %vm380_vm14 = vcmp.lt.s32.totalorder %v376_v42, 16  ;;  %vm522_vm8 = vcmask 1039360  }
  0x18   : > { %vm381_vm15 = vcmp.lt.s32.totalorder %v377_v43, 16  ;;  %vm556_vm10 = vcmask 900096   ;;  %vm573_vm11 = vcmask 891904  }
  0x19   : > { %v356_v22 = vsub.s32 %v970_v9, %v355_v20 }
  0x1b   : > { %v357_v25 = vsub.s32 0, %v356_v22 }
  0x1d   : > { %v358_v28 = vsel %vm348_vm2, %v357_v25, %v356_v22  ;;  %vm1073_vm2 = vmmov 0  }
  0x1e   : > { %vm362_vm3 = vcmp.ne.s32.totalorder %v358_v28, 0  ;;  %vm366_vm4 = vcmp.lt.s32.totalorder %v358_v28, 0  ;;  %v374_v32 = vadd.s32 18, %v358_v28  ;;  %1011 = vmatprep.mubr.msk.bf16.mxu1 %vm1073_vm2, %v1066_v61 }
  0x1f   : > { %vm1158_vm9 = vmand %vm366_vm4, %vm362_vm3  ;;  %vm445_vm3 = vcmask 154624   ;;  %vm443_vm4 = vcmask 1043456  }
  0x20   : > { %v378_v41 = vsel %vm1158_vm9, %v374_v32, %v358_v28  ;;  %vm539_vm9 = vcmask 908288  }
  0x21   : > { %vm382_vm13 = vcmp.lt.s32.totalorder %v378_v41, 16 }
  0x22   : > { %vm386_vm0 = vmand %vm310_vm12, %vm382_vm13  ;;  %vm670_vm12 = vcmask 588800  }
  0x86   : > { %v391_v40 = vpop.permute.xlu0 %390 }
  0x87   : > { %v394_v44 = vmul.f32 %v391_v40, %v277_v37  ;;  %v395_v45 = vmul.f32 %v391_v40, %v278_v38  ;;  %v396_v46 = vmul.f32 %v391_v40, %v279_v39 }
  0x8a   : > { %v401_v47 = vpop.permute.xlu0 %400 }
  0x8b   : > { %v404_v48 = vadd.f32 %v401_v47, %v394_v44  ;;  %v405_v49 = vadd.f32 %v401_v47, %v395_v45  ;;  %v406_v50 = vadd.f32 %v401_v47, %v396_v46 }
  0x8d   : > { %v408_v51 = vmax.f32 %v404_v48, 0.0  ;;  %v409_v52 = vmax.f32 %v405_v49, 0.0  ;;  %v410_v53 = vmax.f32 %v406_v50, 0.0 }
  0x8f   : > { %v412_v54 = vsel %vm380_vm14, %v408_v51, 0.0  ;;  %v413_v55 = vsel %vm381_vm15, %v409_v52, 0.0  ;;  %v414_v56 = vsel %vm386_vm0, %v410_v53, 0.0 }
  0x90   : > { %v416_v57 = vpack.c.bf16 %v412_v54, %v412_v54  ;;  %v994_v58 = vpack.c.bf16 %v414_v56, %v413_v55 }
  0x92   : > { %v971_v60 = vcombine.low %v1063_v59, %v416_v57  ;;  %432 = vst [vmem:[#allocation2 + $0x8] sm:$0xff] %v994_v58  ;;  %439 = vrot.lane.b32.xlu1 %v994_v58, %s1064_s7 }
  0x94   : > { %431 = vst [vmem:[#allocation2] sm:$0xff] %v971_v60  ;;  %457 = vrot.lane.b32.xlu0 %v971_v60, %s1065_s8 }
  0x96   : > { %459 = vrot.lane.b32.xlu1 %v994_v58, %s1065_s8 }
  0x98   : > { %475 = vrot.lane.b32.xlu0 %v971_v60, %s1067_s9 }
  0x99   : > { %v508_v62 = vld [vmem:[#allocation2 + $0xc] sm:$0xf] }
  0x9a   : > { %477 = vrot.lane.b32.xlu1 %v994_v58, %s1067_s9  ;;  %510 = vst.msk [vmem:[#allocation3 + $0x38] sm:$0xf] %vm451_vm1, %v508_v62  ;;  %v512_v0 = vld [vmem:[#allocation2 + $0xc] sm:$0xf] }
  0x9b   : > { %v1172_v63 = vld [vmem:[#allocation2 + $0x4] sm:$0xff]  ;;  %v529_v1 = vld [vmem:[#allocation2 + $0xc] sm:$0xf] }
  0x9c   : > { %493 = vrot.lane.b32.xlu0 %v971_v60, %s1068_s10  ;;  %v546_v2 = vld [vmem:[#allocation2 + $0xc] sm:$0xf] }
  0x9d   : > { %v563_v3 = vld [vmem:[#allocation2 + $0xc] sm:$0xf] }
  0x9e   : > { %495 = vrot.lane.b32.xlu1 %v994_v58, %s1068_s10 }
  0xa0   : > { %515 = vrot.lane.b32.xlu0 %v1172_v63, %s1069_s11 }
  0xa2   : > { %437 = vrot.lane.b32.xlu1 %v971_v60, %s1064_s7 }
  0xa4   : > { %532 = vrot.lane.b32.xlu0 %v1172_v63, %s1070_s12 }
  0xa6   : > { %517 = vrot.lane.b32.xlu1 %v512_v0, %s1069_s11 }
  0xa8   : > { %549 = vrot.lane.b32.xlu0 %v1172_v63, %s1071_s13 }
  0xaa   : > { %534 = vrot.lane.b32.xlu1 %v529_v1, %s1070_s12 }
  0xac   : > { %566 = vrot.lane.b32.xlu0 %v1172_v63, %s1072_s14 }
  0xae   : > { %551 = vrot.lane.b32.xlu1 %v546_v2, %s1071_s13 }
  0xb2   : > { %568 = vrot.lane.b32.xlu1 %v563_v3, %s1072_s14 }
 0x104   : > { %v440_v5 = vpop.permute.xlu1 %439 }
 0x105   : > { %v442_v6 = vrot.slane %v440_v5, 4 }
 0x106   : > { %v458_v7 = vpop.permute.xlu0 %457 }
 0x107   : > { %v447_v8 = vsel %vm445_vm3, %v440_v5, %v442_v6  ;;  %v461_v10 = vrot.slane %v458_v7, 4 }
 0x108   : > { %452 = vst.msk [vmem:[#allocation3 + $0x8] sm:$0xf] %vm451_vm1, %v447_v8  ;;  %v460_v9 = vpop.permute.xlu1 %459 }
 0x109   : > { %v462_v11 = vrot.slane %v460_v9, 4 }
 0x10a   : > { %v476_v13 = vpop.permute.xlu0 %475 }
 0x10b   : > { %v463_v14 = vsel %vm443_vm4, %v461_v10, %v462_v11  ;;  %v466_v15 = vsel %vm464_vm5, %v460_v9, %v462_v11  ;;  %v479_v18 = vrot.slane %v476_v13, 4  ;;  %v579_v11 = vld [vmem:[%s1249_s1] sm:$0xf] }
 0x10c   : > { %v465_v16 = vsel %vm464_vm5, %v458_v7, %v463_v14  ;;  %470 = vst.msk [vmem:[#allocation3 + $0x14] sm:$0xf] %vm451_vm1, %v466_v15  ;;  %v478_v17 = vpop.permute.xlu1 %477  ;;  %v769_v15 = vadd.s32 128, %v1123_v4 }
 0x10d   : > { %v480_v19 = vrot.slane %v478_v17, 4 }
 0x10e   : > { %v494_v20 = vpop.permute.xlu0 %493 }
 0x10f   : > { %v481_v21 = vsel %vm443_vm4, %v479_v18, %v480_v19  ;;  %v484_v22 = vsel %vm482_vm6, %v478_v17, %v480_v19  ;;  %v497_v25 = vrot.slane %v494_v20, 4 }
 0x110   : > { %v483_v23 = vsel %vm482_vm6, %v476_v13, %v481_v21  ;;  %488 = vst.msk [vmem:[#allocation3 + $0x20] sm:$0xf] %vm451_vm1, %v484_v22  ;;  %v496_v24 = vpop.permute.xlu1 %495  ;;  %v1217_v17 = vmul.u32.u64.low 3817748708, %v769_v15  ;;  %v1218_v18 = vmul.u32.u64.high 3817748708, %v769_v15, %v1217_v17 }
 0x111   : > { %v498_v26 = vrot.slane %v496_v24, 4 }
 0x112   : > { %v516_v27 = vpop.permute.xlu0 %515  ;;  %v787_v22 = vshrl.u32 %v1218_v18, 4 }
 0x113   : > { %v499_v28 = vsel %vm443_vm4, %v497_v25, %v498_v26  ;;  %v502_v29 = vsel %vm500_vm7, %v496_v24, %v498_v26  ;;  %v1049_v30 = vld [vmem:[#allocation3 + $0x8] ss:$12 sps:$4 sm:$0xff]   ;;  %v519_v38 = vrot.slane %v516_v27, 4 }
 0x114   : > { %v501_v31 = vsel %vm500_vm7, %v494_v20, %v499_v28  ;;  %506 = vst.msk [vmem:[#allocation3 + $0x2c] sm:$0xf] %vm451_vm1, %v502_v29  ;;  %v438_v32 = vpop.permute.xlu1 %437  ;;  %1002 = vmatpush3.bf16.msra.mxu1 %v1049_v30  ;;  %v1221_v19 = vmul.u32.u64.low 3817748708, %v1134_v12  ;;  %v1222_v20 = vmul.u32.u64.high 3817748708, %v1134_v12, %v1221_v19  ;;  %v788_v25 = vmul.u32 18, %v787_v22 }
 0x115   : > { %v441_v33 = vrot.slane %v438_v32, 4  ;;  %1003 = vmatprep.subr.bf16.mxu1 %v1066_v61  ;;  %v977_v44 = vcombine.high %v483_v23, %v501_v31  ;;  %v976_v50 = vcombine.low %v483_v23, %v501_v31 }
 0x116   : > { %v533_v34 = vpop.permute.xlu0 %532  ;;  %v798_v23 = vshrl.u32 %v1222_v20, 4  ;;  %v789_v28 = vsub.s32 %v769_v15, %v788_v25 }
 0x117   : > { %v444_v35 = vsel %vm443_vm4, %v441_v33, %v442_v6  ;;  %v536_v48 = vrot.slane %v533_v34, 4 }
 0x118   : > { %v446_v36 = vsel %vm445_vm3, %v438_v32, %v444_v35  ;;  %v518_v37 = vpop.permute.xlu1 %517  ;;  %v799_v26 = vmul.u32 18, %v798_v23  ;;  %vm804_vm15 = vcmp.ne.s32.totalorder %v789_v28, 0  ;;  %vm807_vm0 = vcmp.lt.s32.totalorder %v789_v28, 0 }
 0x119   : > { %v520_v39 = vrot.slane %v518_v37, 4  ;;  %527 = vst.msk [vmem:[#allocation3 + $0x44] sm:$0xf] %vm451_vm1, %v518_v37  ;;  %v974_v40 = vcombine.high %v446_v36, %v465_v16  ;;  %v973_v41 = vcombine.low %v446_v36, %v465_v16  ;;  %v813_v31 = vadd.s32 18, %v789_v28 }
 0x11a   : > { %v550_v46 = vpop.permute.xlu0 %549  ;;  %v800_v29 = vsub.s32 %v1134_v12, %v799_v26 }
 0x11b   : > { %v521_v42 = vsel %vm443_vm4, %v519_v38, %v520_v39  ;;  %v1050_v43 = vld [vmem:[#allocation3 + $0x20] ss:$12 sps:$4 sm:$0xff]   ;;  %684 = vmatprep.subr.bf16.mxu0 %v974_v40  ;;  %v553_v56 = vrot.slane %v550_v46, 4 }
 0x11c   : > { %v523_v45 = vsel %vm522_vm8, %v516_v27, %v521_v42  ;;  %v535_v47 = vpop.permute.xlu1 %534  ;;  %685 = vmatpush1.bf16.msra.mxu0 %v973_v41  ;;  %1004 = vmatpush3.bf16.msra.mxu1 %v1050_v43  ;;  %vm808_vm2 = vcmp.lt.s32.totalorder %v800_v29, 0  ;;  %v814_v32 = vadd.s32 18, %v800_v29 }
 0x11d   : > { %v537_v49 = vrot.slane %v535_v47, 4  ;;  %544 = vst.msk [vmem:[#allocation3 + $0x50] sm:$0xf] %vm451_vm1, %v535_v47  ;;  %686 = vmatprep.subr.bf16.mxu0 %v977_v44  ;;  %1005 = vmatprep.subr.bf16.mxu1 %v1066_v61  ;;  %v980_v52 = vcombine.high %v1172_v63, %v523_v45  ;;  %v979_v59 = vcombine.low %v1172_v63, %v523_v45 }
 0x11e   : > { %v567_v58 = vpop.permute.xlu0 %566 }
 0x11f   : > { %v538_v51 = vsel %vm443_vm4, %v536_v48, %v537_v49  ;;  %v570_v1 = vrot.slane %v567_v58, 4 }
 0x120   : > { %v540_v53 = vsel %vm539_vm9, %v533_v34, %v538_v51  ;;  %v552_v54 = vpop.permute.xlu1 %551  ;;  %v1051_v55 = vld [vmem:[#allocation3 + $0x38] ss:$12 sps:$4 sm:$0xff]   ;;  %687 = vmatpush1.bf16.msra.mxu0 %v976_v50  ;;  %vm767_vm9 = vcmask 261120  }
 0x121   : > { %v554_v57 = vrot.slane %v552_v54, 4  ;;  %561 = vst.msk [vmem:[#allocation3 + $0x5c] sm:$0xf] %vm451_vm1, %v552_v54  ;;  %688 = vmatprep.subr.bf16.mxu0 %v980_v52  ;;  %1006 = vmatpush3.bf16.msra.mxu1 %v1051_v55 }
 0x122   : > { %1007 = vmatprep.subr.bf16.mxu1 %v1066_v61 }
 0x123   : > { %v555_v60 = vsel %vm443_vm4, %v553_v56, %v554_v57 }
 0x124   : > { %v557_v62 = vsel %vm556_vm10, %v550_v46, %v555_v60  ;;  %v569_v0 = vpop.permute.xlu1 %568  ;;  %689 = vmatpush1.bf16.msra.mxu0 %v979_v59 }
 0x125   : > { %v571_v2 = vrot.slane %v569_v0, 4  ;;  %578 = vst.msk [vmem:[#allocation3 + $0x68] sm:$0xf] %vm451_vm1, %v569_v0  ;;  %v983_v3 = vcombine.high %v540_v53, %v557_v62  ;;  %v982_v5 = vcombine.low %v540_v53, %v557_v62  ;;  %vm805_vm1 = vcmp.ne.s32.totalorder %v800_v29, 0 }
 0x126   : > { %vm811_vm5 = vmand %vm808_vm2, %vm805_vm1 }
 0x127   : > { %v572_v6 = vsel %vm443_vm4, %v570_v1, %v571_v2  ;;  %690 = vmatprep.subr.bf16.mxu0 %v983_v3 }
 0x128   : > { %v574_v7 = vsel %vm573_vm11, %v567_v58, %v572_v6  ;;  %v1052_v8 = vld [vmem:[#allocation3 + $0x50] ss:$12 sps:$4 sm:$0xff]   ;;  %691 = vmatpush1.bf16.msra.mxu0 %v982_v5 }
 0x129   : > { %v986_v63 = vcombine.high %v574_v7, %v574_v7  ;;  %v985_v9 = vcombine.low %v574_v7, %v574_v7  ;;  %1008 = vmatpush3.bf16.msra.mxu1 %v1052_v8 }
 0x12a   : > { %1009 = vmatprep.subr.bf16.mxu1 %v1066_v61  ;;  %v1214_v61 = vmul.u32.u64.low 3817748708, %v1123_v4  ;;  %v1215_v16 = vmul.u32.u64.high 3817748708, %v1123_v4, %v1214_v61 }
 0x12b   : > { %988 = vmatprep.subr.msk.bf16.mxu0 %vm443_vm4, %v986_v63  ;;  %v676_v10 = vsel %vm443_vm4, %v985_v9, 0 }
 0x12c   : > { %v1053_v13 = vld [vmem:[#allocation3 + $0x68] ss:$0 sps:$4 sm:$0xff]   ;;  %693 = vmatpush1.bf16.msra.mxu0 %v676_v10  ;;  %v776_v21 = vshrl.u32 %v1215_v16, 4 }
 0x12d   : > { %v682_v14 = vsel %vm443_vm4, %v1053_v13, 0  ;;  %vm810_vm4 = vmand %vm807_vm0, %vm804_vm15 }
 0x12e   : > { %1010 = vmatpush3.bf16.msra.mxu1 %v682_v14  ;;  %v777_v24 = vmul.u32 18, %v776_v21  ;;  %v816_v34 = vsel %vm810_vm4, %v813_v31, %v789_v28 }
 0x12f   : > { %989 = vmatmul.mubr.msk.bf16.vlgmr.msra.gmra.mrb[0].mxu0 %vm670_vm12, %v579_v11  ;;  %vm819_vm8 = vcmp.lt.s32.totalorder %v816_v34, 16 }
 0x130   : > { %v778_v27 = vsub.s32 %v1123_v4, %v777_v24  ;;  %v817_v4 = vsel %vm811_vm5, %v814_v32, %v800_v29 }
 0x131   : > { %1012 = vmatmul.mubr.msk.bf16.vlgmr.msra.gmra.mrb[0].mxu1 %vm670_vm12, %v579_v11  ;;  %vm820_vm10 = vcmp.lt.s32.totalorder %v817_v4, 16 }
 0x132   : > { %vm803_vm13 = vcmp.ne.s32.totalorder %v778_v27, 0  ;;  %vm806_vm14 = vcmp.lt.s32.totalorder %v778_v27, 0  ;;  %v812_v30 = vadd.s32 18, %v778_v27 }
 0x133   : > { %vm809_vm3 = vmand %vm806_vm14, %vm803_vm13 }
 0x134   : > { %v815_v33 = vsel %vm809_vm3, %v812_v30, %v778_v27 }
 0x135   : > { %vm818_vm6 = vcmp.lt.s32.totalorder %v815_v33, 16 }
 0x202   : > { %v718_v12 = vpop.f32.mrb[0].mxu0 }
 0x203   : > { %765 = vst [vmem:[%s264_s20] sm:$0xff] %v718_v12  ;;  %v821_v35 = vsel %vm818_vm6, %v718_v12, 0.0  ;;  %v720_v36 = vpop.f32.mrb[1].mxu0 }
 0x204   : > { %v831_v37 = vmul.f32 %v821_v35, %v821_v35  ;;  %766 = vst [vmem:[%s264_s20 + $0x8] sm:$0xff] %v720_v36  ;;  %v822_v38 = vsel %vm819_vm8, %v720_v36, 0.0  ;;  %v722_v39 = vpop.f32.mrb[2].mxu0  ;;  %v759_v40 = vpop.f32.mrb[0].mxu1 }
 0x205   : > { %v824_v41 = vadd.f32 %v822_v38, %v821_v35  ;;  %v832_v42 = vmul.f32 %v822_v38, %v822_v38  ;;  %v723_v43 = vpop.f32.mrb[3].mxu0  ;;  %768 = vst.msk [vmem:[%s264_s20 + $0x10] sm:$0xff] %vm767_vm9, %v759_v40  ;;  %v823_v44 = vsel %vm820_vm10, %v759_v40, 0.0  ;;  %v1013_v45 = vpop.f32.mrb[1].mxu1 }
 0x206   : > { %v833_v46 = vmul.f32 %v823_v44, %v823_v44  ;;  %v762_v47 = vpop.f32.mrb[2].mxu1  ;;  %v825_v48 = vsel %vm767_vm9, %v823_v44, 0.0 }
 0x207   : > { %v834_v49 = vadd.f32 %v832_v42, %v831_v37  ;;  %v1014_v50 = vpop.f32.mrb[3].mxu1  ;;  %v826_v51 = vadd.f32 %v825_v48, %v824_v41 }
 0x208   : > { %v835_v52 = vsel %vm767_vm9, %v833_v46, 0.0 }
 0x209   : > { %827 = vadd.xlane.f32.xlu0 %v826_v51  ;;  %v836_v53 = vadd.f32 %v835_v52, %v834_v49 }
 0x20b   : > { %837 = vadd.xlane.f32.xlu1 %v836_v53 }
 0x296   : > { %v828_v54 = vpop.xlane.xlu0 %827 }
 0x297   : > { %830 = vst.msk [vmem:[%s268_s26] sm:$0xff] %vm500_vm7, %v828_v54 }
 0x298   : > { %v838_v55 = vpop.xlane.xlu1 %837 }
 0x299   : > { %839 = vst.msk [vmem:[%s272_s29] sm:$0xff] %vm500_vm7, %v838_v55 }
 0x29a PF: > { %s17_s21 = sadd.s32 1, %s1060_s21  }
 0x29b   : > { %p14_p4 = scmp.ge.s32.totalorder %s17_s21, 4  }
 0x29d   :  { %16 = sbr.rel (!%p14_p4) target bundleno = 1 (0x1), region = 90 }

// kernel: res_block_forward.3
= control target key start
LH: loop header
LB: loop body
LE: loop exit
PB: predicated region body
PF: predicated region fallthrough
CT: control target
= control target key end

     0   :  { %s1380_s27 = smov 0   ;;  %s1528_s0 = inlined_call_operand.vmem [shape: bf16[2,4,512], index: 0, kind: input, shape index: {}]   ;;  %s1529_s1 = inlined_call_operand.vmem [shape: bf16[8,36], index: 1, kind: input, shape index: {}]   ;;  %s1530_s2 = inlined_call_operand.vmem [shape: bf16[8,4], index: 2, kind: input, shape index: {}]   ;;  %s1531_s3 = inlined_call_operand.vmem [shape: bf16[2,8,512], index: 3, kind: output, shape index: {0}]   ;;  %s1532_s4 = inlined_call_operand.vmem [shape: f32[2,8,1], index: 4, kind: output, shape index: {1}]   ;;  %s1533_s5 = inlined_call_operand.vmem [shape: f32[2,8,1], index: 5, kind: output, shape index: {2}]   ;;  %s1534_s6 = inlined_call_operand.vmem [shape: f32[2,8,288], index: 6, kind: output, shape index: {3}]   ;;  %s1535_s7 = inlined_call_operand.vmem [shape: f32[2,8,1], index: 7, kind: output, shape index: {4}]   ;;  %s1536_s8 = inlined_call_operand.vmem [shape: f32[2,8,1], index: 8, kind: output, shape index: {5}]  }
   0x1 LB: > { %s1205_s28 = sadd.s32 4294967295, %s1321_s27   ;;  %p1209_p0 = scmp.ge.s32.totalorder %s1321_s27, 1  ;;  %s1321_s27 = sphi %s1380_s27, %s19_s27  }
   0x2   : > { %p273_p1 = scmp.lt.s32.totalorder %s1321_s27, 3 }
   0x4   : > { %p274_p2 = pnand %p1209_p0, %p273_p1 }
   0x5   : > { %p328_p3 = scmp.lt.s32.totalorder (!%p274_p2), %s1205_s28, 1  ;;  %v366_v0 = vlaneseq (!%p274_p2)  ;;  %v1323_v1 = vmov (!%p274_p2), 1983009808   ;;  %s1324_s11 = smov (!%p274_p2), 18   ;;  %vm391_vm0 = vcmask (!%p274_p2), 254976   ;;  %v1327_v18 = vmov (!%p274_p2), 0.0  }
   0x6   : > { %277 = sbr.rel (%p274_p2) target bundleno = 553 (0x229), region = 32  ;;  %v364_v2 = vunpack.c.l.s4 (!%p274_p2), %v1323_v1  ;;  %s1325_s12 = smov (!%p274_p2), 19   ;;  %1252 = vmatprep.subr.bf16.mxu1 (!%p274_p2), %v1327_v18  ;;  %v1333_v32 = vmov (!%p274_p2), 0   ;;  %vm1334_vm1 = vmmov (!%p274_p2), 0   ;;  %vm417_vm2 = vcmask (!%p274_p2), 146432  }
   0x7   : > { %v367_v3 = vshrl.u32 (!%p274_p2), %v366_v0, 7  ;;  %s1326_s13 = smov (!%p274_p2), 17   ;;  %s1328_s14 = smov (!%p274_p2), 1   ;;  %725 = vmatprep.mubr.bf16.mxu0 (!%p274_p2), %v1333_v32  ;;  %1258 = vmatprep.mubr.msk.bf16.mxu1 (!%p274_p2), %vm1334_vm1, %v1327_v18  ;;  %vm423_vm3 = vcmask (!%p274_p2), 257026   ;;  %vm383_vm4 = vcmask (!%p274_p2), 1043456   ;;  %vm449_vm5 = vcmask (!%p274_p2), 138240  }
   0x8   : > { %v365_v4 = vunpack.c.0.s8 (!%p274_p2), %v364_v2  ;;  %s1329_s15 = smov (!%p274_p2), 127   ;;  %s1330_s16 = smov (!%p274_p2), 111   ;;  %vm385_vm6 = vcmask (!%p274_p2), 154624   ;;  %vm480_vm7 = vcmask (!%p274_p2), 7168   ;;  %vm532_vm8 = vcmask (!%p274_p2), 1039360  }
   0x9   : > { %s1331_s17 = smov (!%p274_p2), 110   ;;  %s1332_s18 = smov (!%p274_p2), 109   ;;  %vm562_vm9 = vcmask (!%p274_p2), 908288   ;;  %vm592_vm10 = vcmask (!%p274_p2), 900096   ;;  %vm622_vm11 = vcmask (!%p274_p2), 891904   ;;  %vm683_vm12 = vcmask (!%p274_p2), 1041408  }
   0xa   : > { %v368_v5 = vsub.s32 (!%p274_p2), %v365_v4, %v367_v3  ;;  %vm679_vm13 = vcmask (!%p274_p2), 293888   ;;  %vm878_vm14 = vcmask (!%p274_p2), 31744  }
   0xd   : > { %s1544_s28 = smov (!%p328_p3, %s1205_s28), 1 }
   0xe   : > { %s1392_s29 = sshll.u32 %s1544_s28, 3  ;;  %s1243_s19 = sshll.u32 %s1544_s28, 4 }
   0xf   : > { %s1398_s10 = scalar_lea.vmem %s1528_s0, %s1392_s29  ;;  %s1412_s22 = scalar_lea.vmem %s1531_s3, %s1243_s19 }
  0x10   : > { %v393_v6 = vld [vmem:[%s1398_s10] sm:$0xff]  ;;  %849 = vst [vmem:[%s1412_s22] sm:$0xff] %v1333_v32  ;;  %850 = vst [vmem:[%s1412_s22 + $0x8] sm:$0xff] %v1333_v32  ;;  %s1268_s30 = smul.u32 24, %s1544_s28  ;;  %s354_s19 = scalar_lea.vmem %s1535_s7, %s1392_s29 }
  0x11   : > { %v409_v7 = vrot.slane %v393_v6, %v368_v5  ;;  %v395_v8 = vcombine.low %v393_v6, %v393_v6  ;;  %v487_v9 = vld [vmem:[%s1398_s10 + $0x2] sm:$0x3f]  ;;  %v362_v10 = vcombine.high %v393_v6, %v393_v6 }
  0x12   : > { %1219 = vst.sshfl [vmem:[#allocation2 + $0x18] sm:$0xf pattern:$0x76325410] %v487_v9  ;;  %v489_v12 = vcombine.high %v487_v9, %v487_v9  ;;  %v508_v15 = vld [vmem:[%s1398_s10 + $0x2] sm:$0x3f]  ;;  %s350_s28 = scalar_lea.vmem %s1534_s6, %s1268_s30 }
  0x13   : > { %412 = vrot.lane.b32.xlu1 %v409_v7, %s1324_s11  ;;  %377 = vrot.lane.b32.xlu0 %v409_v7, %s1325_s12  ;;  %v402_v11 = vrot.slane %v395_v8, %v368_v5  ;;  %v441_v13 = vrot.slane %v362_v10, %v368_v5  ;;  %v510_v16 = vcombine.low %v508_v15, %v508_v15  ;;  %v538_v17 = vld [vmem:[%s1398_s10 + $0x2] sm:$0x3f] }
  0x14   : > { %v503_v14 = vrot.slane %v489_v12, %v368_v5  ;;  %v524_v19 = vrot.slane %v508_v15, %v368_v5  ;;  %v540_v21 = vcombine.high %v538_v17, %v538_v17  ;;  %v568_v22 = vld [vmem:[%s1398_s10 + $0x2] sm:$0x3f]  ;;  %v547_v24 = vrot.slane %v538_v17, %v368_v5 }
  0x15   : > { %v517_v20 = vrot.slane %v510_v16, %v368_v5  ;;  %v570_v25 = vcombine.low %v568_v22, %v568_v22  ;;  %v598_v26 = vld [vmem:[%s1398_s10 + $0x2] sm:$0x3f]  ;;  %v584_v27 = vrot.slane %v568_v22, %v368_v5 }
  0x16   : > { %507 = vst.msk [vmem:[#allocation2 + $0x20] sm:$0x3] %vm391_vm0, %v503_v14  ;;  %v554_v23 = vrot.slane %v540_v21, %v368_v5  ;;  %v600_v29 = vcombine.high %v598_v26, %v598_v26  ;;  %v607_v31 = vrot.slane %v598_v26, %v368_v5 }
  0x17   : > { %410 = vrot.lane.b32.xlu1 %v402_v11, %s1324_s11  ;;  %442 = vrot.lane.b32.xlu0 %v409_v7, %s1326_s13  ;;  %v577_v28 = vrot.slane %v570_v25, %v368_v5 }
  0x18   : > { %v614_v30 = vrot.slane %v600_v29, %v368_v5 }
  0x19   : > { %v867_v29 = vld [vmem:[#allocation2 + $0x18] sm:$0x33] }
  0x1b   : > { %444 = vrot.lane.b32.xlu1 %v441_v13, %s1326_s13  ;;  %379 = vrot.lane.b32.xlu0 %v441_v13, %s1325_s12  ;;  %s341_s13 = scalar_lea.vmem %s1532_s4, %s1392_s29 }
  0x1f   : > { %475 = vrot.lane.b32.xlu1 %v409_v7, %s1328_s14  ;;  %473 = vrot.lane.b32.xlu0 %v402_v11, %s1328_s14 }
  0x23   : > { %527 = vrot.lane.b32.xlu1 %v524_v19, %s1329_s15  ;;  %525 = vrot.lane.b32.xlu0 %v517_v20, %s1329_s15 }
  0x27   : > { %557 = vrot.lane.b32.xlu1 %v554_v23, %s1330_s16  ;;  %555 = vrot.lane.b32.xlu0 %v547_v24, %s1330_s16  ;;  %s345_s16 = scalar_lea.vmem %s1533_s5, %s1392_s29 }
  0x2b   : > { %587 = vrot.lane.b32.xlu1 %v584_v27, %s1331_s17  ;;  %585 = vrot.lane.b32.xlu0 %v577_v28, %s1331_s17 }
  0x2f   : > { %617 = vrot.lane.b32.xlu1 %v614_v30, %s1332_s18  ;;  %615 = vrot.lane.b32.xlu0 %v607_v31, %s1332_s18  ;;  %v1314_v30 = vld [vmem:[#allocation2 + $0x20] ss:$0 sps:$4 sm:$0x33]  }
  0x85   : > { %v413_v33 = vpop.permute.xlu1 %412  ;;  %v378_v34 = vpop.permute.xlu0 %377 }
  0x86   : > { %v415_v35 = vrot.slane %v413_v33, 4  ;;  %v381_v44 = vrot.slane %v378_v34, 4 }
  0x88   : > { %v419_v36 = vsel %vm417_vm2, %v413_v33, %v415_v35 }
  0x89   : > { %424 = vst.msk [vmem:[#allocation2 + $0x8] sm:$0xc] %vm423_vm3, %v419_v36  ;;  %v411_v37 = vpop.permute.xlu1 %410  ;;  %v443_v38 = vpop.permute.xlu0 %442 }
  0x8a   : > { %v414_v39 = vrot.slane %v411_v37, 4  ;;  %v446_v45 = vrot.slane %v443_v38, 4 }
  0x8c   : > { %v416_v40 = vsel %vm383_vm4, %v414_v39, %v415_v35 }
  0x8d   : > { %v418_v41 = vsel %vm417_vm2, %v411_v37, %v416_v40  ;;  %v445_v42 = vpop.permute.xlu1 %444  ;;  %v380_v43 = vpop.permute.xlu0 %379  ;;  %v628_v37 = vld [vmem:[%s1529_s1] sm:$0xf] }
  0x8e   : > { %422 = vst [vmem:[#allocation2] sm:$0xcc] %v418_v41  ;;  %v447_v46 = vrot.slane %v445_v42, 4  ;;  %v382_v47 = vrot.slane %v380_v43, 4  ;;  %v1234_v41 = vcombine.low %v867_v29, %v867_v29 }
  0x90   : > { %v448_v48 = vsel %vm383_vm4, %v446_v45, %v447_v46  ;;  %v451_v49 = vsel %vm449_vm5, %v445_v42, %v447_v46  ;;  %v384_v50 = vsel %vm383_vm4, %v381_v44, %v382_v47  ;;  %v387_v51 = vsel %vm385_vm6, %v380_v43, %v382_v47  ;;  %v869_v45 = vld [vmem:[%s1530_s2] sm:$0xf] }
  0x91   : > { %v450_v52 = vsel %vm449_vm5, %v443_v38, %v448_v48  ;;  %455 = vst.msk [vmem:[#allocation2 + $0x14] sm:$0x3] %vm391_vm0, %v451_v49  ;;  %v386_v53 = vsel %vm385_vm6, %v378_v34, %v384_v50  ;;  %392 = vst.msk [vmem:[#allocation2 + $0x8] sm:$0x3] %vm391_vm0, %v387_v51  ;;  %v476_v54 = vpop.permute.xlu1 %475  ;;  %v474_v55 = vpop.permute.xlu0 %473  ;;  %v1235_v38 = vcombine.high %v867_v29, %v867_v29  ;;  %v889_v42 = vsel %vm683_vm12, %v1314_v30, 0 }
  0x92   : > { %454 = vst [vmem:[#allocation2 + $0xc] sm:$0x33] %v450_v52  ;;  %390 = vst [vmem:[#allocation2] sm:$0x33] %v386_v53  ;;  %v478_v56 = vrot.slane %v476_v54, 4  ;;  %v477_v57 = vrot.slane %v474_v55, 4 }
  0x93   : > { %v883_v44 = vsel %vm683_vm12, %v1234_v41, 0  ;;  %v775_v46 = vand.u32 127, %v366_v0 }
  0x94   : > { %v482_v58 = vsel %vm480_vm7, %v476_v54, %v478_v56  ;;  %v479_v59 = vsel %vm383_vm4, %v477_v57, %v478_v56 }
  0x95   : > { %486 = vst.msk [vmem:[#allocation2 + $0x14] sm:$0xc] %vm423_vm3, %v482_v58  ;;  %v481_v60 = vsel %vm480_vm7, %v474_v55, %v479_v59  ;;  %v528_v61 = vpop.permute.xlu1 %527  ;;  %v526_v62 = vpop.permute.xlu0 %525  ;;  %v777_v47 = vadd.s32 256, %v775_v46  ;;  %v776_v50 = vadd.s32 128, %v775_v46 }
  0x96   : > { %485 = vst [vmem:[#allocation2 + $0xc] sm:$0xcc] %v481_v60  ;;  %v530_v63 = vrot.slane %v528_v61, 4  ;;  %537 = vst.msk [vmem:[#allocation2 + $0x20] sm:$0xc] %vm423_vm3, %v528_v61  ;;  %v529_v1 = vrot.slane %v526_v62, 4 }
  0x97   : > { %v1458_v48 = vmul.u32.u64.low 3817748708, %v777_v47  ;;  %v1459_v49 = vmul.u32.u64.high 3817748708, %v777_v47, %v1458_v48  ;;  %v1464_v52 = vmul.u32.u64.low 3817748708, %v776_v50  ;;  %v1465_v53 = vmul.u32.u64.high 3817748708, %v776_v50, %v1464_v52 }
  0x98   : > { %v531_v2 = vsel %vm383_vm4, %v529_v1, %v530_v63 }
  0x99   : > { %v533_v3 = vsel %vm532_vm8, %v526_v62, %v531_v2  ;;  %v558_v4 = vpop.permute.xlu1 %557  ;;  %v556_v5 = vpop.permute.xlu0 %555  ;;  %v629_v10 = vld [vmem:[#allocation2] sm:$0xff]  ;;  %v795_v56 = vshrl.u32 %v1465_v53, 4 }
  0x9a   : > { %536 = vst [vmem:[#allocation2 + $0x18] sm:$0xcc] %v533_v3  ;;  %v560_v6 = vrot.slane %v558_v4, 4  ;;  %567 = vst.msk [vmem:[#allocation2 + $0x2c] sm:$0x3] %vm391_vm0, %v558_v4  ;;  %v559_v7 = vrot.slane %v556_v5, 4 }
  0x9b   : > { %v796_v58 = vmul.u32 18, %v795_v56 }
  0x9c   : > { %v561_v8 = vsel %vm383_vm4, %v559_v7, %v560_v6  ;;  %v1302_v9 = vld [vmem:[#allocation2 + $0x8] ss:$12 sps:$4 sm:$0xff]  }
  0x9d   : > { %v563_v11 = vsel %vm562_vm9, %v556_v5, %v561_v8  ;;  %v588_v12 = vpop.permute.xlu1 %587  ;;  %v586_v13 = vpop.permute.xlu0 %585  ;;  %v631_v14 = vld [vmem:[#allocation2 + $0xc] sm:$0xff]  ;;  %1253 = vmatpush3.bf16.msra.mxu1 %v1302_v9  ;;  %v797_v60 = vsub.s32 %v776_v50, %v796_v58 }
  0x9e   : > { %v1303_v15 = vld [vmem:[#allocation2 + $0x4] ss:$12 sps:$4 sm:$0xff]   ;;  %566 = vst [vmem:[#allocation2 + $0x24] sm:$0x33] %v563_v11  ;;  %v590_v16 = vrot.slane %v588_v12, 4  ;;  %v589_v17 = vrot.slane %v586_v13, 4  ;;  %v1220_v19 = vcombine.low %v629_v10, %v631_v14  ;;  %1254 = vmatprep.subr.bf16.mxu1 %v1327_v18 }
  0x9f   : > { %597 = vst.msk [vmem:[#allocation2 + $0x2c] sm:$0xc] %vm423_vm3, %v588_v12  ;;  %693 = vmatprep.subr.bf16.mxu0 %v1303_v15  ;;  %vm815_vm5 = vcmp.lt.s32.totalorder %v797_v60, 0  ;;  %v821_v1 = vadd.s32 18, %v797_v60 }
  0xa0   : > { %v591_v20 = vsel %vm383_vm4, %v589_v17, %v590_v16  ;;  %694 = vmatpush1.bf16.msra.mxu0 %v1220_v19 }
  0xa1   : > { %v593_v21 = vsel %vm592_vm10, %v586_v13, %v591_v20  ;;  %v618_v22 = vpop.permute.xlu1 %617  ;;  %v616_v23 = vpop.permute.xlu0 %615  ;;  %vm865_vm10 = vcmask 257024  }
  0xa2   : > { %596 = vst [vmem:[#allocation2 + $0x24] sm:$0xcc] %v593_v21  ;;  %v620_v24 = vrot.slane %v618_v22, 4  ;;  %627 = vst.msk [vmem:[#allocation2 + $0x38] sm:$0x3] %vm391_vm0, %v618_v22  ;;  %v619_v25 = vrot.slane %v616_v23, 4 }
  0xa4   : > { %v621_v26 = vsel %vm383_vm4, %v619_v25, %v620_v24  ;;  %vm812_vm4 = vcmp.ne.s32.totalorder %v797_v60, 0 }
  0xa5   : > { %v623_v27 = vsel %vm622_vm11, %v616_v23, %v621_v26  ;;  %vm818_vm8 = vmand %vm815_vm5, %vm812_vm4 }
  0xa6   : > { %v1305_v28 = vld [vmem:[#allocation2 + $0x20] ss:$12 sps:$4 sm:$0xff]   ;;  %626 = vst [vmem:[#allocation2 + $0x30] sm:$0x33] %v623_v27  ;;  %v824_v5 = vsel %vm818_vm8, %v821_v1, %v797_v60 }
  0xa7   : > { %1255 = vmatpush3.bf16.msra.mxu1 %v1305_v28 }
  0xa8   : > { %1256 = vmatprep.subr.bf16.mxu1 %v1327_v18 }
  0xa9   : > { %v1306_v31 = vld [vmem:[#allocation2 + $0x1c] ss:$12 sps:$4 sm:$0xff]   ;;  %v1308_v33 = vld [vmem:[#allocation2 + $0x18] ss:$12 sps:$4 sm:$0xff]  }
  0xaa   : > { %v1309_v34 = vld [vmem:[#allocation2 + $0x38] ss:$0 sps:$4 sm:$0x33]   ;;  %695 = vmatprep.subr.bf16.mxu0 %v1306_v31 }
  0xab   : > { %696 = vmatpush1.bf16.msra.mxu0 %v1308_v33  ;;  %v691_v35 = vsel %vm683_vm12, %v1309_v34, 0 }
  0xac   : > { %1257 = vmatpush3.bf16.msra.mxu1 %v691_v35 }
  0xad   : > { %v637_v36 = vld [vmem:[#allocation2 + $0x30] sm:$0x33]  ;;  %1262 = vmatprep.subr.bf16.mxu1 %v1327_v18 }
  0xae   : > { %v1227_v39 = vcombine.high %v637_v36, %v637_v36  ;;  %v1226_v40 = vcombine.low %v637_v36, %v637_v36 }
  0xaf   : > { %1259 = vmatmul.mubr.msk.bf16.vlgmr.msra.gmra.mrb[0].mxu1 %vm679_vm13, %v628_v37 }
  0xb0   : > { %1229 = vmatprep.subr.msk.bf16.mxu0 %vm683_vm12, %v1227_v39  ;;  %v685_v43 = vsel %vm683_vm12, %v1226_v40, 0  ;;  %1263 = vmatpush3.bf16.msra.mxu1 %v889_v42 }
  0xb1   : > { %698 = vmatpush1.bf16.msra.mxu0 %v685_v43  ;;  %1264 = vmatprep.mubr.msk.bf16.mxu1 %vm1334_vm1, %v1327_v18  ;;  %v1461_v51 = vmul.u32.u64.low 3817748708, %v775_v46  ;;  %v1462_v18 = vmul.u32.u64.high 3817748708, %v775_v46, %v1461_v51 }
  0xb2   : > { %1237 = vmatprep.subr.msk.bf16.mxu0 %vm683_vm12, %v1235_v38  ;;  %vm1480_vm12 = vcmp.lt.s32.totalorder %v824_v5, 16 }
  0xb3   : > { %v784_v54 = vshrl.u32 %v1462_v18, 4 }
  0xb4   : > { %1230 = vmatmul.mubr.msk.bf16.vlgmr.msra.gmra.mrb[0].mxu0 %vm679_vm13, %v628_v37  ;;  %vm833_vm13 = vcmask 261120  }
  0xb5   : > { %892 = vmatpush1.bf16.msra.mxu0 %v883_v44  ;;  %923 = vmatprep.mubr.bf16.mxu0 %v1333_v32  ;;  %v806_v32 = vshrl.u32 %v1459_v49, 4  ;;  %v785_v57 = vmul.u32 18, %v784_v54 }
  0xb7   : > { %1265 = vmatmul.mubr.msk.bf16.vlgmr.msra.gmra.mrb[4].mxu1 %vm878_vm14, %v869_v45  ;;  %v807_v55 = vmul.u32 18, %v806_v32  ;;  %v786_v59 = vsub.s32 %v775_v46, %v785_v57 }
  0xb9   : > { %v808_v0 = vsub.s32 %v777_v47, %v807_v55  ;;  %vm811_vm2 = vcmp.ne.s32.totalorder %v786_v59, 0  ;;  %vm814_vm3 = vcmp.lt.s32.totalorder %v786_v59, 0  ;;  %v820_v62 = vadd.s32 18, %v786_v59 }
  0xba   : > { %vm817_vm6 = vmand %vm814_vm3, %vm811_vm2 }
  0xbb   : > { %vm813_vm15 = vcmp.ne.s32.totalorder %v808_v0, 0  ;;  %vm816_vm0 = vcmp.lt.s32.totalorder %v808_v0, 0  ;;  %v822_v61 = vadd.s32 18, %v808_v0  ;;  %v823_v3 = vsel %vm817_vm6, %v820_v62, %v786_v59 }
  0xbc   : > { %1238 = vmatmul.mubr.msk.bf16.vlgmr.msra.gmra.mrb[4].mxu0 %vm878_vm14, %v869_v45  ;;  %vm819_vm1 = vmand %vm816_vm0, %vm813_vm15  ;;  %vm1476_vm11 = vcmp.lt.s32.totalorder %v823_v3, 16 }
  0xbd   : > { %v825_v63 = vsel %vm819_vm1, %v822_v61, %v808_v0 }
  0xbe   : > { %vm1470_vm9 = vcmp.lt.s32.totalorder %v825_v63, 16 }
 0x182   : > { %v768_v4 = vpop.f32.mrb[0].mxu1 }
 0x183   : > { %v831_v6 = vsel %vm1470_vm9, %v768_v4, 0.0  ;;  %v1260_v7 = vpop.f32.mrb[1].mxu1 }
 0x184   : > { %v1245_v9 = vpack.c.bf16 %v831_v6, %v831_v6  ;;  %v771_v10 = vpop.f32.mrb[2].mxu1  ;;  %v842_v14 = vmul.f32 %v831_v6, %v831_v6  ;;  %v834_v21 = vsel %vm833_vm13, %v831_v6, 0.0 }
 0x185   : > { %v1261_v12 = vpop.f32.mrb[3].mxu1 }
 0x186   : > { %866 = vst.msk [vmem:[%s1412_s22 + $0xc] sm:$0xf] %vm865_vm10, %v1245_v9  ;;  %v844_v27 = vsel %vm833_vm13, %v842_v14, 0.0 }
 0x187   : > { %v727_v13 = vpop.f32.mrb[0].mxu0 }
 0x188   : > { %v829_v15 = vsel %vm1476_vm11, %v727_v13, 0.0  ;;  %v729_v16 = vpop.f32.mrb[1].mxu0 }
 0x189   : > { %v840_v17 = vmul.f32 %v829_v15, %v829_v15  ;;  %v830_v19 = vsel %vm1480_vm12, %v729_v16, 0.0  ;;  %v731_v20 = vpop.f32.mrb[2].mxu0 }
 0x18a   : > { %v832_v22 = vadd.f32 %v830_v19, %v829_v15  ;;  %v841_v23 = vmul.f32 %v830_v19, %v830_v19  ;;  %v1244_v24 = vpack.c.bf16 %v830_v19, %v829_v15  ;;  %v732_v25 = vpop.f32.mrb[3].mxu0  ;;  %v966_v26 = vpop.f32.mrb[4].mxu1 }
 0x18b   : > { %v974_v29 = vsel %vm1470_vm9, %v966_v26, 0.0  ;;  %v1266_v30 = vpop.f32.mrb[5].mxu1 }
 0x18c   : > { %864 = vst [vmem:[%s1412_s22 + $0x4] sm:$0xff] %v1244_v24  ;;  %v835_v28 = vadd.f32 %v834_v21, %v832_v22  ;;  %v843_v31 = vadd.f32 %v841_v23, %v840_v17  ;;  %992 = vst.msk [vmem:[%s350_s28 + $0x10] sm:$0xff] %vm833_vm13, %v974_v29  ;;  %v969_v33 = vpop.f32.mrb[6].mxu1  ;;  %v983_v37 = vmul.f32 %v974_v29, %v974_v29  ;;  %v976_v43 = vsel %vm833_vm13, %v974_v29, 0.0  ;;  %s358_s22 = scalar_lea.vmem %s1536_s8, %s1392_s29 }
 0x18d   : > { %v1267_v35 = vpop.f32.mrb[7].mxu1 }
 0x18e   : > { %836 = vadd.xlane.f32.xlu0 %v835_v28  ;;  %v845_v34 = vadd.f32 %v844_v27, %v843_v31  ;;  %v985_v47 = vsel %vm833_vm13, %v983_v37, 0.0 }
 0x18f   : > { %v925_v36 = vpop.f32.mrb[4].mxu0 }
 0x190   : > { %v972_v38 = vsel %vm1476_vm11, %v925_v36, 0.0  ;;  %846 = vadd.xlane.f32.xlu1 %v845_v34  ;;  %v927_v39 = vpop.f32.mrb[5].mxu0 }
 0x191   : > { %v981_v40 = vmul.f32 %v972_v38, %v972_v38  ;;  %990 = vst [vmem:[%s350_s28] sm:$0xff] %v972_v38  ;;  %v973_v41 = vsel %vm1480_vm12, %v927_v39, 0.0  ;;  %v929_v42 = vpop.f32.mrb[6].mxu0 }
 0x192   : > { %v975_v44 = vadd.f32 %v973_v41, %v972_v38  ;;  %v982_v45 = vmul.f32 %v973_v41, %v973_v41  ;;  %991 = vst [vmem:[%s350_s28 + $0x8] sm:$0xff] %v973_v41  ;;  %v930_v46 = vpop.f32.mrb[7].mxu0 }
 0x194   : > { %v977_v48 = vadd.f32 %v976_v43, %v975_v44  ;;  %v984_v49 = vadd.f32 %v982_v45, %v981_v40 }
 0x196   : > { %978 = vadd.xlane.f32.xlu0 %v977_v48  ;;  %v986_v50 = vadd.f32 %v985_v47, %v984_v49 }
 0x19a   : > { %987 = vadd.xlane.f32.xlu0 %v986_v50 }
 0x21b   : > { %v837_v51 = vpop.xlane.xlu0 %836 }
 0x21c   : > { %839 = vst.msk [vmem:[%s341_s13] sm:$0xff] %vm480_vm7, %v837_v51 }
 0x21d   : > { %v847_v18 = vpop.xlane.xlu1 %846 }
 0x21e   : > { %848 = vst.msk [vmem:[%s345_s16] sm:$0xff] %vm480_vm7, %v847_v18 }
 0x223   : > { %v979_v52 = vpop.xlane.xlu0 %978 }
 0x224   : > { %980 = vst.msk [vmem:[%s354_s19] sm:$0xff] %vm480_vm7, %v979_v52 }
 0x227   : > { %v988_v53 = vpop.xlane.xlu0 %987 }
 0x228   : > { %989 = vst.msk [vmem:[%s358_s22] sm:$0xff] %vm480_vm7, %v988_v53 }
 0x229 PF: > { %s19_s27 = sadd.s32 1, %s1321_s27  }
 0x22a   : > { %p16_p4 = scmp.ge.s32.totalorder %s19_s27, 4  }
 0x22c   :  { %18 = sbr.rel (!%p16_p4) target bundleno = 1 (0x1), region = 122 }

</bundles_post_ra>
